<compile_context>
chip_gen: v5e
topology: v5e:2x2
jax: 0.10.0
libtpu: 0.0.40
codegen_flags: <defaults>
</compile_context>

<pallas_src>
import functools

import jax
import jax.numpy as jnp
from jax.experimental import pallas as pl
from jax.experimental.pallas import tpu as pltpu

# ---- module constants (from the PyTorch file) ----
dim_dec = 512
dim_f0 = 257
dim_freq = 80
dim_enc = 512
num_grp = 32

_LANE = 128


def _round_up(x, m):
    return ((x + m - 1) // m) * m


def _pick_vmem_limit():
    # v5e/v6e: 128 MiB physical VMEM -> raise the scoped limit; v7x: 64 MiB -> stay <= 48 MiB.
    try:
        cap = int(pltpu.get_tpu_info().vmem_capacity_bytes)
    except Exception:
        cap = 64 * 1024 * 1024
    return 100 * 1024 * 1024 if cap >= 96 * 1024 * 1024 else 48 * 1024 * 1024


_VMEM_LIMIT = _pick_vmem_limit()


# ---------------------------------------------------------------------------
# Fused Conv1d (kernel=5, "same" pad) + GroupNorm + activation
#   - in-kernel im2col into a bf16 scratch -> single bf16 MXU matmul
#   - GroupNorm: reduce over T first (VPU), then tiny per-group selector matmuls (f32)
# ---------------------------------------------------------------------------
def _conv_gn_kernel(x_ref, w_ref, b_ref, g_ref, be_ref, selcg_ref, selgc_ref,
                    o_ref, col_ref, *, K, T, Cin_p, Cout, G, eps, act):
    x = x_ref[0]                                            # (T + K - 1, Cin_p)
    for k in range(K):                                      # static unrolled taps
        col_ref[:, k * Cin_p:(k + 1) * Cin_p] = x[k:k + T, :].astype(jnp.bfloat16)

    acc = jnp.dot(col_ref[...], w_ref[...],
                  preferred_element_type=jnp.float32) + b_ref[...]        # (T, Cout_p) f32

    # GroupNorm over (channels-in-group x time), per batch element, f32 statistics.
    # Reduce over T first, then map channels -> groups with an M=2 selector matmul.
    n = float(T * (Cout // G))
    s1 = jnp.sum(acc, axis=0, keepdims=True)                # (1, Cout_p) sum
    s2 = jnp.sum(acc * acc, axis=0, keepdims=True)          # (1, Cout_p) sum of squares
    stats_c = jnp.concatenate([s1, s2], axis=0)             # (2, Cout_p)
    stats_g = jnp.dot(stats_c, selcg_ref[...],
                      preferred_element_type=jnp.float32)   # (2, 128)  per-group sums
    mean_g = stats_g[0:1] / n
    var_g = jnp.maximum(stats_g[1:2] / n - mean_g * mean_g, 0.0)   # clamp: no NaN in rsqrt
    mv_g = jnp.concatenate([mean_g, var_g], axis=0)         # (2, 128)
    mv_c = jnp.dot(mv_g, selgc_ref[...],
                   preferred_element_type=jnp.float32)      # (2, Cout_p) broadcast back
    y = (acc - mv_c[0:1]) * jax.lax.rsqrt(mv_c[1:2] + eps)
    y = y * g_ref[...] + be_ref[...]

    if act == "relu":
        y = jnp.maximum(y, 0.0)
    elif act == "tanh":
        y = jnp.tanh(y)
    o_ref[0] = y.astype(o_ref.dtype)


def conv_gn_act(x_btc, cp, act, out_dtype=jnp.float32):
    """x: (B, T, Cin); cp: prepared conv params. Returns (B, T, Cout) in out_dtype."""
    B, T, Cin = x_btc.shape
    K = cp["K"]
    pad = (K - 1) // 2
    Cin_p, Cout_p = cp["Cin_p"], cp["Cout_p"]
    x_pad = jnp.pad(x_btc, ((0, 0), (pad, pad), (0, Cin_p - Cin)))
    Tp = T + 2 * pad

    kernel = functools.partial(_conv_gn_kernel, K=K, T=T, Cin_p=Cin_p,
                               Cout=cp["Cout"], G=cp["G"], eps=1e-5, act=act)
    out = pl.pallas_call(
        kernel,
        out_shape=jax.ShapeDtypeStruct((B, T, Cout_p), out_dtype),
        grid=(B,),
        in_specs=[
            pl.BlockSpec((1, Tp, Cin_p), lambda bi: (bi, 0, 0)),
            pl.BlockSpec((K * Cin_p, Cout_p), lambda bi: (0, 0)),
            pl.BlockSpec((1, Cout_p), lambda bi: (0, 0)),
            pl.BlockSpec((1, Cout_p), lambda bi: (0, 0)),
            pl.BlockSpec((1, Cout_p), lambda bi: (0, 0)),
            pl.BlockSpec((Cout_p, _LANE), lambda bi: (0, 0)),
            pl.BlockSpec((_LANE, Cout_p), lambda bi: (0, 0)),
        ],
        out_specs=pl.BlockSpec((1, T, Cout_p), lambda bi: (bi, 0, 0)),
        scratch_shapes=[pltpu.VMEM((T, K * Cin_p), jnp.bfloat16)],     # bf16 im2col
        compiler_params=pltpu.CompilerParams(
            dimension_semantics=("parallel",),
            vmem_limit_bytes=_VMEM_LIMIT),
    )(x_pad, cp["w"], cp["b"], cp["gamma"], cp["beta"], cp["sel_cg"], cp["sel_gc"])
    return out[:, :, :cp["Cout"]]


# ---------------------------------------------------------------------------
# Tiled dense: y = x @ W + b (bf16 weights, f32 accumulate), N axis parallel.
# Used for the hoisted LSTM input projections and the output projection.
# ---------------------------------------------------------------------------
def _dense_kernel(x_ref, w_ref, b_ref, o_ref):
    o_ref[...] = (jnp.dot(x_ref[...].astype(jnp.bfloat16), w_ref[...],
                          preferred_element_type=jnp.float32)
                  + b_ref[...]).astype(o_ref.dtype)


def dense(x, w_bf16, b_row, out_cols=None, out_dtype=jnp.float32, block_n=256):
    """x: (N, Din); w: (Din_p, Dout_p) bf16; b: (1, Dout_p) f32."""
    N, d_in = x.shape
    d_in_p, d_out_p = w_bf16.shape
    bn = min(block_n, _round_up(N, 8))
    Np = _round_up(N, bn)
    if Np != N or d_in_p != d_in:
        x = jnp.pad(x, ((0, Np - N), (0, d_in_p - d_in)))     # K padded to 128 multiple
    out = pl.pallas_call(
        _dense_kernel,
        out_shape=jax.ShapeDtypeStruct((Np, d_out_p), out_dtype),
        grid=(Np // bn,),
        in_specs=[
            pl.BlockSpec((bn, d_in_p), lambda i: (i, 0)),
            pl.BlockSpec((d_in_p, d_out_p), lambda i: (0, 0)),
            pl.BlockSpec((1, d_out_p), lambda i: (0, 0)),
        ],
        out_specs=pl.BlockSpec((bn, d_out_p), lambda i: (i, 0)),
        compiler_params=pltpu.CompilerParams(
            dimension_semantics=("parallel",),
            vmem_limit_bytes=_VMEM_LIMIT),
    )(x, w_bf16, b_row)
    out = out[:N]
    if out_cols is not None:
        out = out[:, :out_cols]
    return out


# ---------------------------------------------------------------------------
# LSTM recurrence kernel: gates_x precomputed (bias folded in); only h @ W_hh inside
# the loop.  Time axis tiled over an "arbitrary" grid axis; h/c live in vreg loop
# carries within a block and in VMEM scratch across blocks.  Gate order i, f, g, o.
# For bidir: gx is passed twice (forward-indexed and reverse-indexed blocks) and the
# per-gate lanes are [fwd H | bwd H | pad] -- no HBM flip/concat of gx needed.
# Gate math is kept in f32 vregs (v5e has no bf16 VPU/EUP).
# ---------------------------------------------------------------------------
def _lstm_rec_kernel(*refs, T_blk, Hc, h_real, bidir, unroll):
    if bidir:
        gxf_ref, gxr_ref, whh_ref, o_ref, h_ref, c_ref = refs
    else:
        gxf_ref, whh_ref, o_ref, h_ref, c_ref = refs
        gxr_ref = None

    @pl.when(pl.program_id(0) == 0)
    def _init():
        h_ref[...] = jnp.zeros_like(h_ref)
        c_ref[...] = jnp.zeros_like(c_ref)

    if bidir:
        lane = jax.lax.broadcasted_iota(jnp.int32, (1, 4 * Hc), 1)
        is_fwd = (lane % Hc) < h_real          # fwd lanes from gxf, bwd/pad from gxr

    def step(t, carry):
        h, c = carry
        if bidir:
            gx_t = jnp.where(is_fwd, gxf_ref[t], gxr_ref[T_blk - 1 - t])
        else:
            gx_t = gxf_ref[t]
        gates = gx_t.astype(jnp.float32) + jnp.dot(
            h.astype(jnp.bfloat16), whh_ref[...],
            preferred_element_type=jnp.float32)
        i = jax.nn.sigmoid(gates[:, 0 * Hc:1 * Hc])
        f = jax.nn.sigmoid(gates[:, 1 * Hc:2 * Hc])
        g = jnp.tanh(gates[:, 2 * Hc:3 * Hc])
        o = jax.nn.sigmoid(gates[:, 3 * Hc:4 * Hc])
        c_new = f * c + i * g
        h_new = o * jnp.tanh(c_new)
        o_ref[t] = h_new.astype(o_ref.dtype)
        return (h_new, c_new)

    h_fin, c_fin = jax.lax.fori_loop(0, T_blk, step, (h_ref[...], c_ref[...]),
                                     unroll=unroll)
    h_ref[...] = h_fin
    c_ref[...] = c_fin


def lstm_recurrence(gx_tbg, whh_bf16, Hc, *, bidir=False, h_real=None,
                    out_dtype=jnp.float32, t_blk=128, unroll=4):
    """gx: (T, B, 4*Hc) (bias folded in); whh: (Hc, 4*Hc) bf16. Returns (Tp, B, Hc)."""
    T, B, Gw = gx_tbg.shape
    assert Gw == 4 * Hc
    bt = min(t_blk, T)
    Tp = _round_up(T, bt)
    if Tp != T:
        # zero-padded gx rows keep h = c = 0 (preact 0 -> g = 0, c' = 0), so padding is
        # harmless for both time directions as long as the initial state is zero.
        gx_tbg = jnp.pad(gx_tbg, ((0, Tp - T), (0, 0), (0, 0)))
    nb = Tp // bt

    kernel = functools.partial(_lstm_rec_kernel, T_blk=bt, Hc=Hc,
                               h_real=h_real, bidir=bidir, unroll=unroll)
    in_specs = [pl.BlockSpec((bt, B, Gw), lambda i: (i, 0, 0))]
    operands = [gx_tbg]
    if bidir:
        # Same array, reverse-indexed blocks: supplies the bwd direction's time-reversed
        # stream without materializing a flipped copy in HBM.
        in_specs.append(pl.BlockSpec((bt, B, Gw), lambda i: (nb - 1 - i, 0, 0)))
        operands.append(gx_tbg)
    in_specs.append(pl.BlockSpec((Hc, 4 * Hc), lambda i: (0, 0)))
    operands.append(whh_bf16)

    out = pl.pallas_call(
        kernel,
        out_shape=jax.ShapeDtypeStruct((Tp, B, Hc), out_dtype),
        grid=(nb,),
        in_specs=in_specs,
        out_specs=pl.BlockSpec((bt, B, Hc), lambda i: (i, 0, 0)),
        scratch_shapes=[pltpu.VMEM((B, Hc), jnp.float32),
                        pltpu.VMEM((B, Hc), jnp.float32)],
        compiler_params=pltpu.CompilerParams(
            dimension_semantics=("arbitrary",),
            vmem_limit_bytes=_VMEM_LIMIT),
    )(*operands)
    return out


def lstm_layer_uni(x_tbd, lw, out_dtype=jnp.bfloat16):
    """Unidirectional LSTM layer. x: (T, B, Din) -> (T, B, H)."""
    T, B, D = x_tbd.shape
    Hp, H = lw["Hp"], lw["H"]
    gx = dense(x_tbd.reshape(T * B, D), lw["wih"], lw["b"],
               out_dtype=jnp.bfloat16).reshape(T, B, 4 * Hp)
    out = lstm_recurrence(gx, lw["whh"], Hp, out_dtype=out_dtype)
    return out[:T, :, :H]


def lstm_layer_bi(x_tbd, lw, out_dtype=jnp.bfloat16):
    """Bidirectional LSTM layer, directions fused via the packed [fwd|bwd|pad] layout."""
    T, B, D = x_tbd.shape
    H, Hg = lw["H"], lw["Hg"]
    gx = dense(x_tbd.reshape(T * B, D), lw["wih"], lw["b"],
               out_dtype=jnp.bfloat16).reshape(T, B, 4 * Hg)
    out_p = lstm_recurrence(gx, lw["whh"], Hg, bidir=True, h_real=H,
                            out_dtype=out_dtype)            # (Tp, B, Hg)
    Tp = out_p.shape[0]
    fwd = out_p[:T, :, :H]                                  # h_fwd(t)
    bwd = jnp.flip(out_p, axis=0)[:T, :, H:2 * H]           # h_bwd(t) (stored at Tp-1-t)
    return jnp.concatenate([fwd, bwd], axis=-1)             # (T, B, 2H)


def encoder_bilstm(x_btd, layers):
    h = jnp.transpose(x_btd, (1, 0, 2))                     # (T, B, D)
    for li, lw in enumerate(layers):
        last = li == len(layers) - 1
        h = lstm_layer_bi(h, lw, out_dtype=jnp.float32 if last else jnp.bfloat16)
    return jnp.transpose(h, (1, 0, 2))


# ---------------------------------------------------------------------------
# Forward pass (glue in JAX; compute in the kernels above)
# ---------------------------------------------------------------------------
def generator_forward(prep, x, c_org, c_trg, f0_trg, freq):
    """x: (B, T, dim_freq); c_org/c_trg: (B, dim_emb); f0_trg: (B, T, dim_f0)."""
    B, T, _ = x.shape
    neck = prep["dim_neck"]

    # encoder input: mel concat broadcast speaker embedding (channel axis)
    c_org_exp = jnp.broadcast_to(c_org[:, None, :], (B, T, c_org.shape[-1]))
    h = jnp.concatenate([x, c_org_exp], axis=-1)

    # encoder conv stack: 3 x (Conv1d k5 + GroupNorm(32) + relu), bf16 between layers
    for cp in prep["enc_convs"]:
        h = conv_gn_act(h, cp, "relu", out_dtype=jnp.bfloat16)

    # encoder BiLSTM (2 layers, fused packed directions)
    outputs = encoder_bilstm(h, prep["enc_lstm"])            # (B, T, 2*neck) f32
    out_f = outputs[:, :, :neck]
    out_b = outputs[:, :, neck:]

    codes = []
    for i in range(0, T, freq):
        codes.append(jnp.concatenate([out_f[:, i + freq - 1, :], out_b[:, i, :]],
                                     axis=-1))
    codes_cat = jnp.concatenate(codes, axis=-1)

    # decoder input
    code_exp = jnp.concatenate(
        [jnp.broadcast_to(c[:, None, :], (B, freq, 2 * neck)) for c in codes], axis=1)
    c_trg_exp = jnp.broadcast_to(c_trg[:, None, :], (B, T, c_trg.shape[-1]))
    dec_in = jnp.concatenate([code_exp, c_trg_exp, f0_trg], axis=-1)

    # decoder: 3-layer unidirectional LSTM + linear projection
    hh = jnp.transpose(dec_in, (1, 0, 2))
    for lw in prep["dec_lstm"]:
        hh = lstm_layer_uni(hh, lw, out_dtype=jnp.bfloat16)
    dec_out = jnp.transpose(hh, (1, 0, 2))                   # (B, T, dim_dec) bf16
    mel = dense(dec_out.reshape(B * T, dim_dec), prep["proj"]["w"], prep["proj"]["b"],
                out_cols=dim_freq, out_dtype=jnp.float32).reshape(B, T, dim_freq)

    # postnet: 4 x (conv+GN+tanh) then (conv+GN), residual add
    ph = mel
    n_post = len(prep["post_convs"])
    for i, cp in enumerate(prep["post_convs"]):
        last = i == n_post - 1
        ph = conv_gn_act(ph, cp, "none" if last else "tanh",
                         out_dtype=jnp.float32 if last else jnp.bfloat16)
    mel_post = mel + ph

    return mel, mel_post, codes_cat


# ---------------------------------------------------------------------------
# Parameter preparation (done ONCE): torch layouts -> padded bf16 kernel layouts
# ---------------------------------------------------------------------------
def _pad_gate_cols(w_t, H, Hp):
    """(Din, 4H) -> (Din, 4*Hp); each gate block zero-padded from H to Hp lanes."""
    Din = w_t.shape[0]
    return jnp.pad(w_t.reshape(Din, 4, H), ((0, 0), (0, 0), (0, Hp - H))).reshape(Din, 4 * Hp)


def _pad_gate_vec(b, H, Hp):
    return jnp.pad(b.reshape(4, H), ((0, 0), (0, Hp - H))).reshape(4 * Hp)


def _prep_conv(p):
    w = p["w"]                                    # torch layout (Cout, Cin, K)
    Cout, Cin, K = w.shape
    Cin_p = _round_up(Cin, _LANE)
    Cout_p = _round_up(Cout, _LANE)
    G = p["G"]
    wk = jnp.transpose(w, (2, 1, 0))              # (K, Cin, Cout)
    wk = jnp.pad(wk, ((0, 0), (0, Cin_p - Cin), (0, Cout_p - Cout)))
    w2 = wk.reshape(K * Cin_p, Cout_p).astype(jnp.bfloat16)
    b = jnp.pad(p["b"], (0, Cout_p - Cout)).reshape(1, -1)
    gamma = jnp.pad(p["gamma"], (0, Cout_p - Cout)).reshape(1, -1)
    beta = jnp.pad(p["beta"], (0, Cout_p - Cout)).reshape(1, -1)
    ch = jnp.arange(Cout_p)
    gs = Cout // G
    sel = ((ch[:, None] // gs == jnp.arange(_LANE)[None, :])
           & (ch[:, None] < Cout)).astype(jnp.float32)              # (Cout_p, 128)
    return dict(w=w2, b=b, gamma=gamma, beta=beta, sel_cg=sel, sel_gc=sel.T,
                K=K, Cin=Cin, Cin_p=Cin_p, Cout=Cout, Cout_p=Cout_p, G=G)


def _prep_lstm_uni(p):
    H = p["w_hh"].shape[1]
    Hp = _round_up(H, _LANE)
    Din = p["w_ih"].shape[1]
    Din_p = _round_up(Din, _LANE)                                             # e.g. 289 -> 384
    wih = _pad_gate_cols(p["w_ih"].T, H, Hp)
    wih = jnp.pad(wih, ((0, Din_p - Din), (0, 0))).astype(jnp.bfloat16)       # (Din_p, 4Hp)
    whh = jnp.pad(_pad_gate_cols(p["w_hh"].T, H, Hp),
                  ((0, Hp - H), (0, 0))).astype(jnp.bfloat16)                 # (Hp, 4Hp)
    b = _pad_gate_vec(p["b_ih"] + p["b_hh"], H, Hp).reshape(1, -1)            # (1, 4Hp)
    # NOTE: padded gate columns/rows/biases are zero, so padded hidden lanes stay exactly
    # zero (c_pad stays 0, h_pad = 0.5 * tanh(0) = 0). Required for correctness.
    return dict(wih=wih, whh=whh, b=b, H=H, Hp=Hp)


def _prep_lstm_bi(p):
    """Packed bidirectional layout: per-gate lanes [fwd H | bwd H | pad to Hg]."""
    H = p["w_hh_f"].shape[1]
    Hg = _round_up(2 * H, 32)                    # keeps 4*Hg a multiple of 128
    Din = p["w_ih_f"].shape[1]
    Din_p = _round_up(Din, _LANE)

    wih = jnp.zeros((Din, 4, Hg), jnp.float32)
    wih = wih.at[:, :, :H].set(p["w_ih_f"].T.reshape(Din, 4, H))
    wih = wih.at[:, :, H:2 * H].set(p["w_ih_b"].T.reshape(Din, 4, H))
    wih = wih.reshape(Din, 4 * Hg)
    wih = jnp.pad(wih, ((0, Din_p - Din), (0, 0))).astype(jnp.bfloat16)       # (Din_p, 4Hg)

    b = jnp.zeros((4, Hg), jnp.float32)
    b = b.at[:, :H].set((p["b_ih_f"] + p["b_hh_f"]).reshape(4, H))
    b = b.at[:, H:2 * H].set((p["b_ih_b"] + p["b_hh_b"]).reshape(4, H))
    b = b.reshape(1, 4 * Hg)

    # Block-diagonal recurrent weights in the packed layout:
    #   rows   [h_fwd (H) | h_bwd (H) | 0], cols per gate [fwd (H) | bwd (H) | 0].
    whh = jnp.zeros((Hg, 4, Hg), jnp.float32)
    whh = whh.at[:H, :, :H].set(p["w_hh_f"].T.reshape(H, 4, H))
    whh = whh.at[H:2 * H, :, H:2 * H].set(p["w_hh_b"].T.reshape(H, 4, H))
    whh = whh.reshape(Hg, 4 * Hg).astype(jnp.bfloat16)                        # (Hg, 4Hg)
    # NOTE: padded lanes stay exactly zero (zero padded biases / wih cols / whh rows+cols).
    return dict(wih=wih, whh=whh, b=b, H=H, Hg=Hg)


def _prep_dense(w, b):
    d_out, d_in = w.shape
    d_out_p = _round_up(d_out, _LANE)
    d_in_p = _round_up(d_in, _LANE)
    w_t = jnp.pad(w.T, ((0, d_in_p - d_in), (0, d_out_p - d_out))).astype(jnp.bfloat16)
    b_p = jnp.pad(b, (0, d_out_p - d_out)).reshape(1, -1)
    return dict(w=w_t, b=b_p)


def prepare_params(raw):
    return {
        "dim_neck": raw["dim_neck"],
        "enc_convs": [_prep_conv(p) for p in raw["enc_convs"]],
        "post_convs": [_prep_conv(p) for p in raw["post_convs"]],
        "enc_lstm": [_prep_lstm_bi(p) for p in raw["enc_lstm"]],
        "dec_lstm": [_prep_lstm_uni(p) for p in raw["dec_lstm"]],
        "proj": _prep_dense(raw["proj_w"], raw["proj_b"]),
    }


# ---------------------------------------------------------------------------
# Deterministic synthetic parameters (torch layouts)
# ---------------------------------------------------------------------------
def init_params(key, dim_neck, dim_emb):
    keys = iter(jax.random.split(key, 64))

    def nrm(shape, scale=0.05):
        return scale * jax.random.normal(next(keys), shape, dtype=jnp.float32)

    params = {"dim_neck": dim_neck}

    enc_convs, cin = [], dim_freq + dim_emb
    for _ in range(3):
        enc_convs.append(dict(w=nrm((dim_enc, cin, 5)), b=nrm((dim_enc,)),
                              gamma=jnp.ones((dim_enc,), jnp.float32),
                              beta=jnp.zeros((dim_enc,), jnp.float32), G=num_grp))
        cin = dim_enc
    params["enc_convs"] = enc_convs

    enc_lstm, din = [], dim_enc
    for _ in range(2):
        layer = {}
        for d in ("f", "b"):
            layer["w_ih_" + d] = nrm((4 * dim_neck, din))
            layer["w_hh_" + d] = nrm((4 * dim_neck, dim_neck))
            layer["b_ih_" + d] = nrm((4 * dim_neck,))
            layer["b_hh_" + d] = nrm((4 * dim_neck,))
        enc_lstm.append(layer)
        din = 2 * dim_neck
    params["enc_lstm"] = enc_lstm

    dec_lstm, din = [], 2 * dim_neck + dim_emb + dim_f0
    for _ in range(3):
        dec_lstm.append(dict(w_ih=nrm((4 * dim_dec, din)),
                             w_hh=nrm((4 * dim_dec, dim_dec)),
                             b_ih=nrm((4 * dim_dec,)),
                             b_hh=nrm((4 * dim_dec,))))
        din = dim_dec
    params["dec_lstm"] = dec_lstm

    params["proj_w"] = nrm((dim_freq, dim_dec))
    params["proj_b"] = nrm((dim_freq,))

    post, cin = [], dim_freq
    for i in range(5):
        cout = 512 if i < 4 else dim_freq
        G = num_grp if i < 4 else 5
        post.append(dict(w=nrm((cout, cin, 5)), b=nrm((cout,)),
                         gamma=jnp.ones((cout,), jnp.float32),
                         beta=jnp.zeros((cout,), jnp.float32), G=G))
        cin = cout
    params["post_convs"] = post
    return params


# ---------------------------------------------------------------------------
if __name__ == "__main__":
    key = jax.random.PRNGKey(0)
    B, T = 2, 8
    dim_neck, dim_emb, freq = 8, 16, 4            # constructor args (T % freq == 0)

    kp, kx, ko, kt, kf = jax.random.split(key, 5)
    raw = init_params(kp, dim_neck, dim_emb)
    prep = prepare_params(raw)                    # one-time weight prep (packed, padded, bf16)

    x = jax.random.normal(kx, (B, T, dim_freq), dtype=jnp.float32)
    c_org = jax.random.normal(ko, (B, dim_emb), dtype=jnp.float32)
    c_trg = jax.random.normal(kt, (B, dim_emb), dtype=jnp.float32)
    f0_trg = jax.random.normal(kf, (B, T, dim_f0), dtype=jnp.float32)

    mel, mel_post, codes = generator_forward(prep, x, c_org, c_trg, f0_trg, freq)
    jax.block_until_ready((mel, mel_post, codes))

    assert mel.shape == (B, T, dim_freq)
    assert mel_post.shape == (B, T, dim_freq)
    assert codes.shape == (B, (T // freq) * 2 * dim_neck)
    assert bool(jnp.isfinite(mel).all() & jnp.isfinite(mel_post).all()
                & jnp.isfinite(codes).all())
    print("KERNEL_OK")
</pallas_src>

<mosaic_0001>
module attributes {stable_mosaic.version = 11 : i64} {
  func.func @_conv_gn_kernel(%arg0: i32, %arg1: memref<1x12x128xf32, #tpu.memory_space<vmem>>, %arg2: memref<640x512xbf16, #tpu.memory_space<vmem>>, %arg3: memref<1x512xf32, #tpu.memory_space<vmem>>, %arg4: memref<1x512xf32, #tpu.memory_space<vmem>>, %arg5: memref<1x512xf32, #tpu.memory_space<vmem>>, %arg6: memref<512x128xf32, #tpu.memory_space<vmem>>, %arg7: memref<128x512xf32, #tpu.memory_space<vmem>>, %arg8: memref<1x8x512xbf16, #tpu.memory_space<vmem>>, %arg9: memref<8x640xbf16, #tpu.memory_space<vmem>>) attributes {dimension_semantics = [#tpu.dimension_semantics<parallel>], iteration_bounds = array<i64: 2>, scalar_prefetch = 0 : i64, scratch_operands = 1 : i64, tpu.core_type = #tpu.core_type<tc>, window_params = [{transform_indices = @transform_0, window_bounds = array<i64: 1, 12, 128>}, {pipeline_mode = #tpu.pipeline_mode<synchronous>, transform_indices = @transform_1, window_bounds = array<i64: 640, 512>}, {pipeline_mode = #tpu.pipeline_mode<synchronous>, transform_indices = @transform_2, window_bounds = array<i64: 1, 512>}, {pipeline_mode = #tpu.pipeline_mode<synchronous>, transform_indices = @transform_3, window_bounds = array<i64: 1, 512>}, {pipeline_mode = #tpu.pipeline_mode<synchronous>, transform_indices = @transform_4, window_bounds = array<i64: 1, 512>}, {pipeline_mode = #tpu.pipeline_mode<synchronous>, transform_indices = @transform_5, window_bounds = array<i64: 512, 128>}, {pipeline_mode = #tpu.pipeline_mode<synchronous>, transform_indices = @transform_6, window_bounds = array<i64: 128, 512>}, {transform_indices = @transform_7, window_bounds = array<i64: 1, 8, 512>}]} {
    %c0 = arith.constant 0 : index
    %c0_0 = arith.constant 0 : index
    %c0_1 = arith.constant 0 : index
    %0 = vector.load %arg1[%c0, %c0_0, %c0_1] : memref<1x12x128xf32, #tpu.memory_space<vmem>>, vector<1x12x128xf32>
    %1 = vector.shape_cast %0 : vector<1x12x128xf32> to vector<12x128xf32>
    %2 = vector.extract_strided_slice %1 {offsets = [0, 0], sizes = [8, 128], strides = [1, 1]} : vector<12x128xf32> to vector<8x128xf32>
    %3 = arith.truncf %2 : vector<8x128xf32> to vector<8x128xbf16>
    %c0_2 = arith.constant 0 : index
    %c0_3 = arith.constant 0 : index
    %4 = vector.load %arg9[%c0_2, %c0_3] : memref<8x640xbf16, #tpu.memory_space<vmem>>, vector<8x128xbf16>
    tpu.vector_store %arg9[%c0_2, %c0_3], %3 {strides = array<i32>} : memref<8x640xbf16, #tpu.memory_space<vmem>>, vector<8x128xbf16>,
    %5 = vector.extract_strided_slice %1 {offsets = [1, 0], sizes = [8, 128], strides = [1, 1]} : vector<12x128xf32> to vector<8x128xf32>
    %6 = arith.truncf %5 : vector<8x128xf32> to vector<8x128xbf16>
    %c0_4 = arith.constant 0 : index
    %c128 = arith.constant 128 : index
    %7 = vector.load %arg9[%c0_4, %c128] : memref<8x640xbf16, #tpu.memory_space<vmem>>, vector<8x128xbf16>
    tpu.vector_store %arg9[%c0_4, %c128], %6 {strides = array<i32>} : memref<8x640xbf16, #tpu.memory_space<vmem>>, vector<8x128xbf16>,
    %8 = vector.extract_strided_slice %1 {offsets = [2, 0], sizes = [8, 128], strides = [1, 1]} : vector<12x128xf32> to vector<8x128xf32>
    %9 = arith.truncf %8 : vector<8x128xf32> to vector<8x128xbf16>
    %c0_5 = arith.constant 0 : index
    %c256 = arith.constant 256 : index
    %10 = vector.load %arg9[%c0_5, %c256] : memref<8x640xbf16, #tpu.memory_space<vmem>>, vector<8x128xbf16>
    tpu.vector_store %arg9[%c0_5, %c256], %9 {strides = array<i32>} : memref<8x640xbf16, #tpu.memory_space<vmem>>, vector<8x128xbf16>,
    %11 = vector.extract_strided_slice %1 {offsets = [3, 0], sizes = [8, 128], strides = [1, 1]} : vector<12x128xf32> to vector<8x128xf32>
    %12 = arith.truncf %11 : vector<8x128xf32> to vector<8x128xbf16>
    %c0_6 = arith.constant 0 : index
    %c384 = arith.constant 384 : index
    %13 = vector.load %arg9[%c0_6, %c384] : memref<8x640xbf16, #tpu.memory_space<vmem>>, vector<8x128xbf16>
    tpu.vector_store %arg9[%c0_6, %c384], %12 {strides = array<i32>} : memref<8x640xbf16, #tpu.memory_space<vmem>>, vector<8x128xbf16>,
    %14 = vector.extract_strided_slice %1 {offsets = [4, 0], sizes = [8, 128], strides = [1, 1]} : vector<12x128xf32> to vector<8x128xf32>
    %15 = arith.truncf %14 : vector<8x128xf32> to vector<8x128xbf16>
    %c0_7 = arith.constant 0 : index
    %c512 = arith.constant 512 : index
    %16 = vector.load %arg9[%c0_7, %c512] : memref<8x640xbf16, #tpu.memory_space<vmem>>, vector<8x128xbf16>
    tpu.vector_store %arg9[%c0_7, %c512], %15 {strides = array<i32>} : memref<8x640xbf16, #tpu.memory_space<vmem>>, vector<8x128xbf16>,
    %c0_8 = arith.constant 0 : index
    %c0_9 = arith.constant 0 : index
    %17 = vector.load %arg9[%c0_8, %c0_9] : memref<8x640xbf16, #tpu.memory_space<vmem>>, vector<8x640xbf16>
    %c0_10 = arith.constant 0 : index
    %c0_11 = arith.constant 0 : index
    %18 = vector.load %arg2[%c0_10, %c0_11] : memref<640x512xbf16, #tpu.memory_space<vmem>>, vector<640x512xbf16>
    %cst = arith.constant dense<0.000000e+00> : vector<8x512xf32>
    %19 = tpu.matmul %17, %18, %cst {dimension_numbers = #tpu.dot_dimension_numbers<[1], [0], [0], [1], [0, 0, 1, 1], [], []>} : vector<8x640xbf16>, vector<640x512xbf16>, vector<8x512xf32> -> vector<8x512xf32>
    %c0_12 = arith.constant 0 : index
    %c0_13 = arith.constant 0 : index
    %20 = vector.load %arg3[%c0_12, %c0_13] : memref<1x512xf32, #tpu.memory_space<vmem>>, vector<1x512xf32>
    %21 = vector.broadcast %20 : vector<1x512xf32> to vector<8x512xf32>
    %22 = arith.addf %19, %21 : vector<8x512xf32>
    %cst_14 = arith.constant dense<0.000000e+00> : vector<512xf32>
    %23 = vector.multi_reduction <add>, %22, %cst_14 [0] : vector<8x512xf32> to vector<512xf32>
    %24 = vector.shape_cast %23 : vector<512xf32> to vector<1x512xf32>
    %25 = arith.mulf %22, %22 : vector<8x512xf32>
    %cst_15 = arith.constant dense<0.000000e+00> : vector<512xf32>
    %26 = vector.multi_reduction <add>, %25, %cst_15 [0] : vector<8x512xf32> to vector<512xf32>
    %27 = vector.shape_cast %26 : vector<512xf32> to vector<1x512xf32>
    %28 = tpu.concatenate %24, %27 in 0 : vector<1x512xf32>, vector<1x512xf32> -> vector<2x512xf32>
    %c0_16 = arith.constant 0 : index
    %c0_17 = arith.constant 0 : index
    %29 = vector.load %arg6[%c0_16, %c0_17] : memref<512x128xf32, #tpu.memory_space<vmem>>, vector<512x128xf32>
    %cst_18 = arith.constant dense<0.000000e+00> : vector<2x128xf32>
    %30 = tpu.matmul %28, %29, %cst_18 {dimension_numbers = #tpu.dot_dimension_numbers<[1], [0], [0], [1], [0, 0, 1, 1], [], []>} : vector<2x512xf32>, vector<512x128xf32>, vector<2x128xf32> -> vector<2x128xf32>
    %31 = vector.extract_strided_slice %30 {offsets = [0, 0], sizes = [1, 128], strides = [1, 1]} : vector<2x128xf32> to vector<1x128xf32>
    %cst_19 = arith.constant 1.280000e+02 : f32
    %32 = vector.broadcast %cst_19 : f32 to vector<1x128xf32>
    %33 = arith.divf %31, %32 : vector<1x128xf32>
    %34 = vector.extract_strided_slice %30 {offsets = [1, 0], sizes = [1, 128], strides = [1, 1]} : vector<2x128xf32> to vector<1x128xf32>
    %cst_20 = arith.constant 1.280000e+02 : f32
    %35 = vector.broadcast %cst_20 : f32 to vector<1x128xf32>
    %36 = arith.divf %34, %35 : vector<1x128xf32>
    %37 = arith.mulf %33, %33 : vector<1x128xf32>
    %38 = arith.subf %36, %37 : vector<1x128xf32>
    %cst_21 = arith.constant 0.000000e+00 : f32
    %39 = vector.broadcast %cst_21 : f32 to vector<1x128xf32>
    %40 = arith.maximumf %38, %39 : vector<1x128xf32>
    %41 = tpu.concatenate %33, %40 in 0 : vector<1x128xf32>, vector<1x128xf32> -> vector<2x128xf32>
    %c0_22 = arith.constant 0 : index
    %c0_23 = arith.constant 0 : index
    %42 = vector.load %arg7[%c0_22, %c0_23] : memref<128x512xf32, #tpu.memory_space<vmem>>, vector<128x512xf32>
    %cst_24 = arith.constant dense<0.000000e+00> : vector<2x512xf32>
    %43 = tpu.matmul %41, %42, %cst_24 {dimension_numbers = #tpu.dot_dimension_numbers<[1], [0], [0], [1], [0, 0, 1, 1], [], []>} : vector<2x128xf32>, vector<128x512xf32>, vector<2x512xf32> -> vector<2x512xf32>
    %44 = vector.extract_strided_slice %43 {offsets = [0, 0], sizes = [1, 512], strides = [1, 1]} : vector<2x512xf32> to vector<1x512xf32>
    %45 = vector.broadcast %44 : vector<1x512xf32> to vector<8x512xf32>
    %46 = arith.subf %22, %45 : vector<8x512xf32>
    %47 = vector.extract_strided_slice %43 {offsets = [1, 0], sizes = [1, 512], strides = [1, 1]} : vector<2x512xf32> to vector<1x512xf32>
    %cst_25 = arith.constant 9.99999974E-6 : f32
    %48 = vector.broadcast %cst_25 : f32 to vector<1x512xf32>
    %49 = arith.addf %47, %48 : vector<1x512xf32>
    %50 = math.rsqrt %49 : vector<1x512xf32>
    %51 = vector.broadcast %50 : vector<1x512xf32> to vector<8x512xf32>
    %52 = arith.mulf %46, %51 : vector<8x512xf32>
    %c0_26 = arith.constant 0 : index
    %c0_27 = arith.constant 0 : index
    %53 = vector.load %arg4[%c0_26, %c0_27] : memref<1x512xf32, #tpu.memory_space<vmem>>, vector<1x512xf32>
    %54 = vector.broadcast %53 : vector<1x512xf32> to vector<8x512xf32>
    %55 = arith.mulf %52, %54 : vector<8x512xf32>
    %c0_28 = arith.constant 0 : index
    %c0_29 = arith.constant 0 : index
    %56 = vector.load %arg5[%c0_28, %c0_29] : memref<1x512xf32, #tpu.memory_space<vmem>>, vector<1x512xf32>
    %57 = vector.broadcast %56 : vector<1x512xf32> to vector<8x512xf32>
    %58 = arith.addf %55, %57 : vector<8x512xf32>
    %cst_30 = arith.constant 0.000000e+00 : f32
    %59 = vector.broadcast %cst_30 : f32 to vector<8x512xf32>
    %60 = arith.maximumf %58, %59 : vector<8x512xf32>
    %61 = arith.truncf %60 : vector<8x512xf32> to vector<8x512xbf16>
    %c0_31 = arith.constant 0 : index
    %c0_32 = arith.constant 0 : index
    %c0_33 = arith.constant 0 : index
    %62 = vector.load %arg8[%c0_31, %c0_32, %c0_33] : memref<1x8x512xbf16, #tpu.memory_space<vmem>>, vector<1x8x512xbf16>
    %63 = vector.shape_cast %62 : vector<1x8x512xbf16> to vector<8x512xbf16>
    %64 = vector.shape_cast %61 : vector<8x512xbf16> to vector<1x8x512xbf16>
    tpu.vector_store %arg8[%c0_31, %c0_32, %c0_33], %64 {strides = array<i32>} : memref<1x8x512xbf16, #tpu.memory_space<vmem>>, vector<1x8x512xbf16>,
    return
  }
  func.func @transform_0(%arg0: i32) -> (i32, i32, i32) {
    %c0_i32 = arith.constant 0 : i32
    %c0_i32_0 = arith.constant 0 : i32
    %c0_i32_1 = arith.constant 0 : i32
    return %arg0, %c0_i32, %c0_i32_0 : i32, i32, i32
  }
  func.func @transform_1(%arg0: i32) -> (i32, i32) {
    %c0_i32 = arith.constant 0 : i32
    %c0_i32_0 = arith.constant 0 : i32
    %c0_i32_1 = arith.constant 0 : i32
    return %c0_i32, %c0_i32_0 : i32, i32
  }
  func.func @transform_2(%arg0: i32) -> (i32, i32) {
    %c0_i32 = arith.constant 0 : i32
    %c0_i32_0 = arith.constant 0 : i32
    %c0_i32_1 = arith.constant 0 : i32
    return %c0_i32, %c0_i32_0 : i32, i32
  }
  func.func @transform_3(%arg0: i32) -> (i32, i32) {
    %c0_i32 = arith.constant 0 : i32
    %c0_i32_0 = arith.constant 0 : i32
    %c0_i32_1 = arith.constant 0 : i32
    return %c0_i32, %c0_i32_0 : i32, i32
  }
  func.func @transform_4(%arg0: i32) -> (i32, i32) {
    %c0_i32 = arith.constant 0 : i32
    %c0_i32_0 = arith.constant 0 : i32
    %c0_i32_1 = arith.constant 0 : i32
    return %c0_i32, %c0_i32_0 : i32, i32
  }
  func.func @transform_5(%arg0: i32) -> (i32, i32) {
    %c0_i32 = arith.constant 0 : i32
    %c0_i32_0 = arith.constant 0 : i32
    %c0_i32_1 = arith.constant 0 : i32
    return %c0_i32, %c0_i32_0 : i32, i32
  }
  func.func @transform_6(%arg0: i32) -> (i32, i32) {
    %c0_i32 = arith.constant 0 : i32
    %c0_i32_0 = arith.constant 0 : i32
    %c0_i32_1 = arith.constant 0 : i32
    return %c0_i32, %c0_i32_0 : i32, i32
  }
  func.func @transform_7(%arg0: i32) -> (i32, i32, i32) {
    %c0_i32 = arith.constant 0 : i32
    %c0_i32_0 = arith.constant 0 : i32
    %c0_i32_1 = arith.constant 0 : i32
    return %arg0, %c0_i32, %c0_i32_0 : i32, i32, i32
  }
}

</mosaic_0001>

<bundles_post_ra>
// kernel: tpu_custom_call.1
= control target key start
LH: loop header
LB: loop body
LE: loop exit
PB: predicated region body
PF: predicated region fallthrough
CT: control target
= control target key end

     0   :  { %s3604_s0 = inlined_call_operand.vmem [shape: f32[2,12,128], index: 0, kind: input, shape index: {}]   ;;  %s3605_s1 = inlined_call_operand.hbm [shape: bf16[640,512], index: 1, kind: input, shape index: {}]   ;;  %s3606_s2 = inlined_call_operand.vmem [shape: f32[1,512], index: 2, kind: input, shape index: {}]   ;;  %s3607_s3 = inlined_call_operand.vmem [shape: f32[1,512], index: 3, kind: input, shape index: {}]   ;;  %s3608_s4 = inlined_call_operand.vmem [shape: f32[1,512], index: 4, kind: input, shape index: {}]   ;;  %s3609_s5 = inlined_call_operand.hbm [shape: f32[512,128], index: 5, kind: input, shape index: {}]   ;;  %s3610_s6 = inlined_call_operand.hbm [shape: f32[128,512], index: 6, kind: input, shape index: {}]   ;;  %s3611_s7 = inlined_call_operand.hbm [shape: bf16[2,8,512], index: 7, kind: output, shape index: {}]  }
   0x1   :  { %3613 = sst [smem:[#allocation15_spill]] %s3605_s1 }
   0x2   :  { %3614 = sst [smem:[#allocation16_spill]] %s3609_s5 }
   0x3   :  { %12 = vsyncpa [#allocation4], 0 }
   0x4   :  { %13 = vsyncpa [#allocation7], 0 }
   0x5   :  { %14 = vsyncpa [#allocation5], 0 }
   0x6   :  { %16 = vsyncpa [#allocation5 + $0x1], 0  ;;  %s3321_s24 = smov 0   ;;  %s3323_s25 = smov 0  }
   0x7   :  { %s3325_s26 = smov 0   ;;  %s3327_s27 = smov 0  }
   0x8 LB: > { %3615 = sst [smem:[#allocation13_spill]] %s3265_s26  ;;  %s3342_s28 = sadd.s32 4294967295, %s3269_s27   ;;  %s3269_s27 = sphi %s3327_s27, %s3635_s27   ;;  %s3265_s26 = sphi %s3325_s26, %s3632_s26   ;;  %s3261_s25 = sphi %s3323_s25, %s3634_s25   ;;  %s3257_s24 = sphi %s3321_s24, %s3633_s24  }
   0x9   : > { %s2200_s29 = sadd.s32 4294967294, %s3269_s27   ;;  %s3346_s30 = sadd.s32 1, %s3269_s27  }
   0xa   : > { %s181_s8 = sadd.s32 1, %s3265_s26  ;;  %s178_s9 = ssub.s32 %s3269_s27, %s3346_s30 }
   0xb   : > { %p191_p0 = scmp.ne.s32.totalorder %s3265_s26, %s3261_s25  ;;  %p179_p1 = scmp.eq.s32.totalorder %s178_s9, 0 }
   0xc   : > { %p192_p2 = scmp.eq.s32.totalorder %s3342_s28, 1  ;;  %p197_p3 = scmp.ne.s32.totalorder %s3261_s25, %s3257_s24 }
   0xd   : > { %p198_p4 = scmp.eq.s32.totalorder %s2200_s29, 1  ;;  %p2201_p7 = scmp.ge.s32.totalorder %s3269_s27, 1 }
   0xe   : > { %s3357_s10 = scalar_select %p179_p1, %s3265_s26, %s181_s8  }
   0xf   : > { %p3359_p5 = por %p192_p2, %p191_p0  ;;  %p3363_p6 = por %p198_p4, %p197_p3 }
  0x10   : > { %3616 = sst [smem:[#allocation14_spill]] %s3357_s10  ;;  %p205_p8 = scmp.lt.s32.totalorder %s3269_s27, 3 }
  0x11   : > { %p3050_p9 = scmp.eq.s32.totalorder %s3342_s28, 0  ;;  %s3620_s5 = sld [smem:[#allocation16_spill]] }
  0x12   : > { %p3370_p10 = pnand %p2201_p7, %p205_p8  ;;  %s3271_s17 = smov [#allocation6]  }
  0x13   : > { %s241_s18 = sshll.u32 %s3271_s17, 4  ;;  %s3622_s1 = sld [smem:[#allocation15_spill]]  ;;  %s242_s18 = int_to_ptr.vmem [resolvable:$true] %s241_s18 }
  0x14   : > { %p3036_p11 = pneg %p3370_p10  ;;  %s3272_s23 = smov 128  }
  0x15   : > { %s3273_s29 = smov 8   ;;  %s3274_s8 = smov [#allocation3]  }
  0x16   : > { %p3381_p12 = pnand %p3050_p9, %p3036_p11  ;;  %s218_s9 = sshll.u32 %s3274_s8, 4  ;;  %s219_s9 = int_to_ptr.vmem [resolvable:$true] %s218_s9 }
  0x17   : > { %s239_s16 = sshll.u32 %s3620_s5, 4  ;;  %s3275_s14 = smov 256   ;;  %s240_s16 = int_to_ptr.hbm [resolvable:$true] %s239_s16 }
  0x18   : > { %3042 = dma.hbm_to_vmem [thread:$0]  (!%p3381_p12), %s240_s16, 8192, %s242_s18, [#allocation7], %s3272_s23, %s3272_s23, %s3273_s29  }
  0x19   : > { %s216_s22 = sshll.u32 %s3622_s1, 4  ;;  %s3276_s15 = smov 16   ;;  %s217_s22 = int_to_ptr.hbm [resolvable:$true] %s216_s22 }
  0x1a   : > { %3039 = dma.hbm_to_vmem [thread:$0]  (!%p3381_p12), %s217_s22, 20480, %s219_s9, [#allocation4], %s3275_s14, %s3275_s14, %s3276_s15  }
  0x1b   : > { %s253_s20 = sshll.u32 %s3610_s6, 4  ;;  %s3277_s21 = smov [#allocation8]   ;;  %s254_s20 = int_to_ptr.hbm [resolvable:$true] %s253_s20 }
  0x1c   : > { %s255_s1 = sshll.u32 %s3277_s21, 4  ;;  %s3278_s10 = smov 512   ;;  %s256_s1 = int_to_ptr.vmem [resolvable:$true] %s255_s1 }
  0x1d   : > { %s3279_s26 = smov 32   ;;  %279 = sbr.rel (%p3370_p10) target bundleno = 666 (0x29a), region = 48 }
  0x1e   : > { %3045 = dma.hbm_to_vmem [thread:$0]  (!%p3381_p12), %s254_s20, 8192, %s256_s1, [#allocation7], %s3278_s10, %s3278_s10, %s3279_s26  }
  0x22   : > { %3244 = dma.done.wait (%p3050_p9), [#allocation4], 20480  }
  0x23   : > { %3246 = vsyncadd (%p3050_p9), [#allocation4], 4294946816 }
  0x24   : > { %3248 = dma.done.wait (%p3050_p9), [#allocation7], 16384  }
  0x25   : > { %3250 = vsyncadd (%p3050_p9), [#allocation7], 4294950912  ;;  %v2329_v0 = vld [vmem:[#allocation3 + $0xe0] sm:$0xf]  ;;  %v2891_v1 = vld [vmem:[#allocation3 + $0xec] sm:$0xf0] }
  0x26   : > { %v2457_v2 = vld [vmem:[#allocation3 + $0x1e0] sm:$0xf]  ;;  %v2330_v3 = vor.u32 %v2891_v1, %v2329_v0  ;;  %v2923_v4 = vld [vmem:[#allocation3 + $0x1ec] sm:$0xf0]  ;;  %p322_p13 = scmp.lt.s32.totalorder %s3342_s28, 1  ;;  %vm353_vm0 = vcmask 1042432  }
  0x27   : > { %v2585_v5 = vld [vmem:[#allocation3 + $0x2e0] sm:$0xf]  ;;  %v2955_v6 = vld [vmem:[#allocation3 + $0x2ec] sm:$0xf0]  ;;  %v2458_v7 = vor.u32 %v2923_v4, %v2457_v2  ;;  %vm354_vm1 = vcmask 1046532   ;;  %vm377_vm9 = vcmask 1041408  }
  0x28   : > { %v2586_v8 = vor.u32 %v2955_v6, %v2585_v5  ;;  %v2713_v9 = vld [vmem:[#allocation3 + $0x3e0] sm:$0xf]  ;;  %v2987_v10 = vld [vmem:[#allocation3 + $0x3ec] sm:$0xf0]  ;;  %1377 = vmatpush.bf16.msra.mxu0 %v2330_v3  ;;  %s3411_s1 = scalar_select %p322_p13, %s3342_s28, 1  ;;  %vm3429_vm4 = vmor %vm353_vm0, %vm354_vm1  ;;  %vm378_vm10 = vcmask 1045508  }
  0x29   : > { %v2313_v11 = vld [vmem:[#allocation3 + $0xc0] sm:$0xf]  ;;  %v2714_v12 = vor.u32 %v2987_v10, %v2713_v9  ;;  %v2887_v13 = vld [vmem:[#allocation3 + $0xcc] sm:$0xf0]  ;;  %1390 = vmatpush.bf16.msra.mxu1 %v2458_v7  ;;  %vm332_vm2 = vsmask.f32 3328  ;;  %vm3457_vm11 = vmor %vm377_vm9, %vm378_vm10 }
  0x2a   : > { %v2441_v14 = vld [vmem:[#allocation3 + $0x1c0] sm:$0xf]  ;;  %v2919_v15 = vld [vmem:[#allocation3 + $0x1cc] sm:$0xf0]  ;;  %1403 = vmatpush.bf16.msra.mxu2 %v2586_v8  ;;  %v2314_v16 = vor.u32 %v2887_v13, %v2313_v11  ;;  %s2860_s5 = sshll.u32 %s3411_s1, 4  ;;  %vm1689_vm12 = vcmask 1040384  }
  0x2b   : > { %v2442_v17 = vor.u32 %v2919_v15, %v2441_v14  ;;  %v2569_v18 = vld [vmem:[#allocation3 + $0x2c0] sm:$0xf]  ;;  %v2951_v19 = vld [vmem:[#allocation3 + $0x2cc] sm:$0xf0]  ;;  %1416 = vmatpush.bf16.msra.mxu3 %v2714_v12  ;;  %s326_s13 = scalar_lea.vmem %s3604_s0, %s2860_s5  ;;  %vm333_vm3 = vsmask.f32 7440 }
  0x2c   : > { %v2697_v20 = vld [vmem:[#allocation3 + $0x3c0] sm:$0xf]  ;;  %v2570_v21 = vor.u32 %v2951_v19, %v2569_v18  ;;  %v2983_v22 = vld [vmem:[#allocation3 + $0x3cc] sm:$0xf0]  ;;  %1378 = vmatpush.bf16.msra.mxu0 %v2314_v16  ;;  %vm3435_vm5 = vmor %vm332_vm2, %vm333_vm3  ;;  %vm362_vm6 = vsmask.f32 2304 }
  0x2d   : > { %v2297_v23 = vld [vmem:[#allocation3 + $0xa0] sm:$0xf]  ;;  %v2883_v24 = vld [vmem:[#allocation3 + $0xac] sm:$0xf0]  ;;  %v2698_v25 = vor.u32 %v2983_v22, %v2697_v20  ;;  %1391 = vmatpush.bf16.msra.mxu1 %v2442_v17  ;;  %vm363_vm7 = vsmask.f32 6416 }
  0x2e   : > { %v2425_v26 = vld [vmem:[#allocation3 + $0x1a0] sm:$0xf]  ;;  %v2915_v27 = vld [vmem:[#allocation3 + $0x1ac] sm:$0xf0]  ;;  %v2298_v29 = vor.u32 %v2883_v24, %v2297_v23  ;;  %1404 = vmatpush.bf16.msra.mxu2 %v2570_v21  ;;  %vm3448_vm8 = vmor %vm362_vm6, %vm363_vm7  ;;  %s319_s8 = sand.u32 1, %s3261_s25   ;;  %s3021_s14 = sshll.u32 %s3342_s28, 4 }
  0x2f   : > { %v2553_v28 = vld [vmem:[#allocation3 + $0x2a0] sm:$0xf]  ;;  %v2947_v30 = vld [vmem:[#allocation3 + $0x2ac] sm:$0xf0]  ;;  %v2426_v33 = vor.u32 %v2915_v27, %v2425_v26  ;;  %1417 = vmatpush.bf16.msra.mxu3 %v2698_v25  ;;  %s2210_s9 = sshll.u32 %s319_s8, 4  ;;  %s2105_s21 = scalar_lea.hbm %s3611_s7, %s3021_s14 }
  0x30   : > { %v2681_v31 = vld [vmem:[#allocation3 + $0x3a0] sm:$0xf]  ;;  %v2979_v32 = vld [vmem:[#allocation3 + $0x3ac] sm:$0xf0]  ;;  %v2554_v34 = vor.u32 %v2947_v30, %v2553_v28  ;;  %1379 = vmatpush.bf16.msra.mxu0 %v2298_v29  ;;  %v2889_v30 = vld [vmem:[#allocation3 + $0xe4] sm:$0xf] }
  0x31   : > { %v2281_v35 = vld [vmem:[#allocation3 + $0x80] sm:$0xf]  ;;  %v2879_v36 = vld [vmem:[#allocation3 + $0x8c] sm:$0xf0]  ;;  %v2682_v38 = vor.u32 %v2979_v32, %v2681_v31  ;;  %1392 = vmatpush.bf16.msra.mxu1 %v2426_v33  ;;  %v2331_v32 = vld [vmem:[#allocation3 + $0xf0] sm:$0xf0] }
  0x32   : > { %v2409_v37 = vld [vmem:[#allocation3 + $0x180] sm:$0xf]  ;;  %v2911_v39 = vld [vmem:[#allocation3 + $0x18c] sm:$0xf0]  ;;  %v2282_v44 = vor.u32 %v2879_v36, %v2281_v35  ;;  %1405 = vmatpush.bf16.msra.mxu2 %v2554_v34  ;;  %v2921_v33 = vld [vmem:[#allocation3 + $0x1e4] sm:$0xf] }
  0x33   : > { %v2537_v40 = vld [vmem:[#allocation3 + $0x280] sm:$0xf]  ;;  %v2943_v41 = vld [vmem:[#allocation3 + $0x28c] sm:$0xf0]  ;;  %v2410_v45 = vor.u32 %v2911_v39, %v2409_v37  ;;  %1418 = vmatpush.bf16.msra.mxu3 %v2682_v38  ;;  %v2459_v34 = vld [vmem:[#allocation3 + $0x1f0] sm:$0xf0] }
  0x34   : > { %v2665_v42 = vld [vmem:[#allocation3 + $0x380] sm:$0xf]  ;;  %v2975_v43 = vld [vmem:[#allocation3 + $0x38c] sm:$0xf0]  ;;  %v2538_v46 = vor.u32 %v2943_v41, %v2537_v40  ;;  %1380 = vmatpush.bf16.msra.mxu0 %v2282_v44  ;;  %v2953_v37 = vld [vmem:[#allocation3 + $0x2e4] sm:$0xf]  ;;  %v2334_v44 = vor.u32 %v2889_v30, %v2331_v32 }
  0x35   : > { %v2265_v47 = vld [vmem:[#allocation3 + $0x60] sm:$0xf]  ;;  %v2875_v48 = vld [vmem:[#allocation3 + $0x6c] sm:$0xf0]  ;;  %v2666_v50 = vor.u32 %v2975_v43, %v2665_v42  ;;  %1393 = vmatpush.bf16.msra.mxu1 %v2410_v45  ;;  %v2587_v38 = vld [vmem:[#allocation3 + $0x2f0] sm:$0xf0]  ;;  %v2462_v45 = vor.u32 %v2921_v33, %v2459_v34 }
  0x36   : > { %v2393_v49 = vld [vmem:[#allocation3 + $0x160] sm:$0xf]  ;;  %v2907_v51 = vld [vmem:[#allocation3 + $0x16c] sm:$0xf0]  ;;  %v2266_v56 = vor.u32 %v2875_v48, %v2265_v47  ;;  %1406 = vmatpush.bf16.msra.mxu2 %v2538_v46  ;;  %v2885_v43 = vld [vmem:[#allocation3 + $0xc4] sm:$0xf] }
  0x37   : > { %v2521_v52 = vld [vmem:[#allocation3 + $0x260] sm:$0xf]  ;;  %v2939_v53 = vld [vmem:[#allocation3 + $0x26c] sm:$0xf0]  ;;  %v2394_v57 = vor.u32 %v2907_v51, %v2393_v49  ;;  %1419 = vmatpush.bf16.msra.mxu3 %v2666_v50  ;;  %v2315_v46 = vld [vmem:[#allocation3 + $0xd0] sm:$0xf0]  ;;  %v2590_v49 = vor.u32 %v2953_v37, %v2587_v38 }
  0x38   : > { %v2649_v54 = vld [vmem:[#allocation3 + $0x360] sm:$0xf]  ;;  %v2971_v55 = vld [vmem:[#allocation3 + $0x36c] sm:$0xf0]  ;;  %v2522_v58 = vor.u32 %v2939_v53, %v2521_v52  ;;  %1381 = vmatpush.bf16.msra.mxu0 %v2266_v56  ;;  %v2917_v47 = vld [vmem:[#allocation3 + $0x1c4] sm:$0xf] }
  0x39   : > { %v2249_v59 = vld [vmem:[#allocation3 + $0x40] sm:$0xf]  ;;  %v2871_v60 = vld [vmem:[#allocation3 + $0x4c] sm:$0xf0]  ;;  %v2650_v62 = vor.u32 %v2971_v55, %v2649_v54  ;;  %1394 = vmatpush.bf16.msra.mxu1 %v2394_v57  ;;  %v2443_v48 = vld [vmem:[#allocation3 + $0x1d0] sm:$0xf0] }
  0x3a   : > { %v2377_v61 = vld [vmem:[#allocation3 + $0x140] sm:$0xf]  ;;  %v2903_v63 = vld [vmem:[#allocation3 + $0x14c] sm:$0xf0]  ;;  %v2250_v4 = vor.u32 %v2871_v60, %v2249_v59  ;;  %1407 = vmatpush.bf16.msra.mxu2 %v2522_v58  ;;  %v2949_v50 = vld [vmem:[#allocation3 + $0x2c4] sm:$0xf] }
  0x3b   : > { %v2505_v0 = vld [vmem:[#allocation3 + $0x240] sm:$0xf]  ;;  %v2935_v1 = vld [vmem:[#allocation3 + $0x24c] sm:$0xf0]  ;;  %v2378_v5 = vor.u32 %v2903_v63, %v2377_v61  ;;  %1420 = vmatpush.bf16.msra.mxu3 %v2650_v62  ;;  %v2571_v51 = vld [vmem:[#allocation3 + $0x2d0] sm:$0xf0]  ;;  %v2318_v62 = vor.u32 %v2885_v43, %v2315_v46  ;;  %v2446_v63 = vor.u32 %v2917_v47, %v2443_v48 }
  0x3c   : > { %v2633_v2 = vld [vmem:[#allocation3 + $0x340] sm:$0xf]  ;;  %v2967_v3 = vld [vmem:[#allocation3 + $0x34c] sm:$0xf0]  ;;  %v2506_v6 = vor.u32 %v2935_v1, %v2505_v0  ;;  %1382 = vmatpush.bf16.msra.mxu0 %v2250_v4  ;;  %v328_v55 = vld [vmem:[%s326_s13 + $0x8] sm:$0xf] }
  0x3d   : > { %v2233_v7 = vld [vmem:[#allocation3 + $0x20] sm:$0xf]  ;;  %v2867_v8 = vld [vmem:[#allocation3 + $0x2c] sm:$0xf0]  ;;  %v2634_v10 = vor.u32 %v2967_v3, %v2633_v2  ;;  %1395 = vmatpush.bf16.msra.mxu1 %v2378_v5  ;;  %v2881_v57 = vld [vmem:[#allocation3 + $0xa4] sm:$0xf]  ;;  %v3421_v61 = vpack.c.bf16 %v328_v55, %v328_v55  ;;  %v2574_v3 = vor.u32 %v2949_v50, %v2571_v51 }
  0x3e   : > { %v2361_v9 = vld [vmem:[#allocation3 + $0x120] sm:$0xf]  ;;  %v2899_v11 = vld [vmem:[#allocation3 + $0x12c] sm:$0xf0]  ;;  %v2234_v16 = vor.u32 %v2867_v8, %v2233_v7  ;;  %1408 = vmatpush.bf16.msra.mxu2 %v2506_v6  ;;  %v2299_v58 = vld [vmem:[#allocation3 + $0xb0] sm:$0xf0] }
  0x3f   : > { %v2489_v12 = vld [vmem:[#allocation3 + $0x220] sm:$0xf]  ;;  %v2931_v13 = vld [vmem:[#allocation3 + $0x22c] sm:$0xf0]  ;;  %v2362_v19 = vor.u32 %v2899_v11, %v2361_v9  ;;  %1421 = vmatpush.bf16.msra.mxu3 %v2634_v10  ;;  %v2913_v59 = vld [vmem:[#allocation3 + $0x1a4] sm:$0xf] }
  0x40   : > { %v2617_v14 = vld [vmem:[#allocation3 + $0x320] sm:$0xf]  ;;  %v2963_v15 = vld [vmem:[#allocation3 + $0x32c] sm:$0xf0]  ;;  %v2490_v20 = vor.u32 %v2931_v13, %v2489_v12  ;;  %1383 = vmatpush.bf16.msra.mxu0 %v2234_v16  ;;  %v2427_v0 = vld [vmem:[#allocation3 + $0x1b0] sm:$0xf0] }
  0x41   : > { %v2217_v17 = vld [vmem:[#allocation3] sm:$0xf]  ;;  %v2863_v18 = vld [vmem:[#allocation3 + $0xc] sm:$0xf0]  ;;  %v2618_v24 = vor.u32 %v2963_v15, %v2617_v14  ;;  %1396 = vmatpush.bf16.msra.mxu1 %v2362_v19  ;;  %v2945_v1 = vld [vmem:[#allocation3 + $0x2a4] sm:$0xf]  ;;  %v2302_v14 = vor.u32 %v2881_v57, %v2299_v58  ;;  %v2430_v15 = vor.u32 %v2913_v59, %v2427_v0 }
  0x42   : > { %v2345_v21 = vld [vmem:[#allocation3 + $0x100] sm:$0xf]  ;;  %v2895_v22 = vld [vmem:[#allocation3 + $0x10c] sm:$0xf0]  ;;  %v2218_v31 = vor.u32 %v2863_v18, %v2217_v17  ;;  %1409 = vmatpush.bf16.msra.mxu2 %v2490_v20  ;;  %v2555_v2 = vld [vmem:[#allocation3 + $0x2b0] sm:$0xf0] }
  0x43   : > { %v2473_v23 = vld [vmem:[#allocation3 + $0x200] sm:$0xf]  ;;  %v2927_v25 = vld [vmem:[#allocation3 + $0x20c] sm:$0xf0]  ;;  %v2346_v35 = vor.u32 %v2895_v22, %v2345_v21  ;;  %1422 = vmatpush.bf16.msra.mxu3 %v2618_v24  ;;  %v345_v8 = vshll.u32 %v3421_v61, 16  ;;  %v2558_v18 = vor.u32 %v2945_v1, %v2555_v2  ;;  %v358_v30 = vrot.slane %v3421_v61, 5 }
  0x44   : > { %v2601_v26 = vld [vmem:[#allocation3 + $0x300] sm:$0xf]  ;;  %v2959_v27 = vld [vmem:[#allocation3 + $0x30c] sm:$0xf0]  ;;  %v2474_v36 = vor.u32 %v2927_v25, %v2473_v23  ;;  %1384 = vmatpush.bf16.msra.mxu0 %v2218_v31  ;;  %v2877_v10 = vld [vmem:[#allocation3 + $0x84] sm:$0xf] }
  0x45   : > { %v2841_v28 = vld [vmem:[#allocation3 + $0x4e0] sm:$0xf]  ;;  %v3019_v29 = vld [vmem:[#allocation3 + $0x4ec] sm:$0xf0]  ;;  %v2602_v39 = vor.u32 %v2959_v27, %v2601_v26  ;;  %1397 = vmatpush.bf16.msra.mxu1 %v2346_v35  ;;  %v2283_v11 = vld [vmem:[#allocation3 + $0x90] sm:$0xf0] }
  0x46   : > { %v2842_v40 = vor.u32 %v3019_v29, %v2841_v28  ;;  %v2825_v41 = vld [vmem:[#allocation3 + $0x4c0] sm:$0xf]  ;;  %v3015_v42 = vld [vmem:[#allocation3 + $0x4cc] sm:$0xf0]  ;;  %1410 = vmatpush.bf16.msra.mxu2 %v2474_v36  ;;  %v2909_v16 = vld [vmem:[#allocation3 + $0x184] sm:$0xf]  ;;  %v2286_v25 = vor.u32 %v2877_v10, %v2283_v11 }
  0x47   : > { %v2809_v52 = vld [vmem:[#allocation3 + $0x4a0] sm:$0xf]  ;;  %v3011_v53 = vld [vmem:[#allocation3 + $0x4ac] sm:$0xf0]  ;;  %1423 = vmatpush.bf16.msra.mxu3 %v2602_v39  ;;  %v2826_v56 = vor.u32 %v3015_v42, %v2825_v41  ;;  %v2411_v17 = vld [vmem:[#allocation3 + $0x190] sm:$0xf0] }
  0x48   : > { %v327_v54 = vld [vmem:[%s326_s13] sm:$0xff]  ;;  %1429 = vmatpush.bf16.msrb.mxu0 %v2842_v40  ;;  %v2793_v4 = vld [vmem:[#allocation3 + $0x480] sm:$0xf]  ;;  %v2810_v9 = vor.u32 %v3011_v53, %v2809_v52  ;;  %v2941_v19 = vld [vmem:[#allocation3 + $0x284] sm:$0xf]  ;;  %v347_v22 = vrot.slane %v345_v8, 5  ;;  %v2414_v31 = vor.u32 %v2909_v16, %v2411_v17 }
  0x49   : > { %v3419_v60 = vpack.c.bf16 %v327_v54, %v327_v54  ;;  %1442 = vmatpush.bf16.msrb.mxu1 %v2334_v44  ;;  %v3007_v5 = vld [vmem:[#allocation3 + $0x48c] sm:$0xf0]  ;;  %v2539_v20 = vld [vmem:[#allocation3 + $0x290] sm:$0xf0]  ;;  %v2777_v27 = vld [vmem:[#allocation3 + $0x460] sm:$0xf] }
  0x4a   : > { %1455 = vmatpush.bf16.msrb.mxu2 %v2462_v45  ;;  %v2794_v24 = vor.u32 %v3007_v5, %v2793_v4  ;;  %v3003_v28 = vld [vmem:[#allocation3 + $0x46c] sm:$0xf0]  ;;  %v2873_v33 = vld [vmem:[#allocation3 + $0x64] sm:$0xf]  ;;  %v2267_v34 = vld [vmem:[#allocation3 + $0x70] sm:$0xf0]  ;;  %v2542_v41 = vor.u32 %v2941_v19, %v2539_v20 }
  0x4b   : > { %1468 = vmatpush.bf16.msrb.mxu3 %v2590_v49  ;;  %330 = vst [vmem:[#allocation2] sm:$0xf] %v3419_v60  ;;  %v336_v6 = vshrl.u32 %v3419_v60, 16  ;;  %v339_v7 = vshll.u32 %v3419_v60, 16  ;;  %v2213_v29 = vrot.slane %v3419_v60, 9  ;;  %v369_v40 = vshrl.u32 %v3421_v61, 16 }
  0x4c   : > { %1430 = vmatpush.bf16.msrb.mxu0 %v2826_v56  ;;  %v2905_v35 = vld [vmem:[#allocation3 + $0x164] sm:$0xf]  ;;  %v2395_v36 = vld [vmem:[#allocation3 + $0x170] sm:$0xf0]  ;;  %v372_v44 = vrot.slane %v345_v8, 6  ;;  %v2778_v48 = vor.u32 %v3003_v28, %v2777_v27  ;;  %v2270_v52 = vor.u32 %v2873_v33, %v2267_v34  ;;  %v2214_v5 = vrot.slane %v3419_v60, 10 }
  0x4d   : > { %v338_v12 = vrot.slane %v336_v6, 4  ;;  %v341_v13 = vrot.slane %v339_v7, 5  ;;  %1443 = vmatpush.bf16.msrb.mxu1 %v2318_v62  ;;  %v359_v37 = vsel %vm3429_vm4, %v2213_v29, %v358_v30  ;;  %v365_v38 = vrot.slane %v336_v6, 5  ;;  %v2937_v43 = vld [vmem:[#allocation3 + $0x264] sm:$0xf]  ;;  %s321_s15 = scalar_lea.vmem [#allocation9], %s2210_s9 }
  0x4e   : > { %1456 = vmatpush.bf16.msrb.mxu2 %v2446_v63  ;;  %v366_v39 = vrot.slane %v339_v7, 6  ;;  %361 = vst [vmem:[#allocation2 + $0x8] sm:$0xf] %v359_v37  ;;  %v2523_v45 = vld [vmem:[#allocation3 + $0x270] sm:$0xf0]  ;;  %v371_v47 = vrot.slane %v369_v40, 5  ;;  %v2398_v53 = vor.u32 %v2905_v35, %v2395_v36 }
  0x4f   : > { %1469 = vmatpush.bf16.msrb.mxu3 %v2574_v3  ;;  %v342_v21 = vor.u32 %v341_v13, %v338_v12  ;;  %v2761_v49 = vld [vmem:[#allocation3 + $0x440] sm:$0xf]  ;;  %v2999_v50 = vld [vmem:[#allocation3 + $0x44c] sm:$0xf0]  ;;  %v2869_v54 = vld [vmem:[#allocation3 + $0x44] sm:$0xf]  ;;  %v2526_v58 = vor.u32 %v2937_v43, %v2523_v45 }
  0x50   : > { %1431 = vmatpush.bf16.msrb.mxu0 %v2810_v9  ;;  %v367_v46 = vor.u32 %v366_v39, %v365_v38  ;;  %v2251_v55 = vld [vmem:[#allocation3 + $0x50] sm:$0xf0]  ;;  %v373_v57 = vor.u32 %v372_v44, %v371_v47  ;;  %v2901_v59 = vld [vmem:[#allocation3 + $0x144] sm:$0xf]  ;;  %v2745_v2 = vld [vmem:[#allocation3 + $0x420] sm:$0xf]  ;;  %v2762_v3 = vor.u32 %v2999_v50, %v2761_v49 }
  0x51   : > { %v343_v32 = vrot.slane %v342_v21, 4  ;;  %1444 = vmatpush.bf16.msrb.mxu1 %v2302_v14  ;;  %v2379_v62 = vld [vmem:[#allocation3 + $0x150] sm:$0xf0]  ;;  %v2933_v63 = vld [vmem:[#allocation3 + $0x244] sm:$0xf]  ;;  %v2254_v6 = vor.u32 %v2869_v54, %v2251_v55  ;;  %s2107_s1 = sshll.u32 %s321_s15, 4  ;;  %s2108_s1 = int_to_ptr.vmem [resolvable:$true] %s2107_s1 }
  0x52   : > { %1457 = vmatpush.bf16.msrb.mxu2 %v2430_v15  ;;  %v368_v56 = vrot.slane %v367_v46, 4  ;;  %v2507_v0 = vld [vmem:[#allocation3 + $0x250] sm:$0xf0]  ;;  %v2995_v4 = vld [vmem:[#allocation3 + $0x42c] sm:$0xf0]  ;;  %v2382_v7 = vor.u32 %v2901_v59, %v2379_v62  ;;  %v382_v15 = vrot.slane %v3421_v61, 6 }
  0x53   : > { %1470 = vmatpush.bf16.msrb.mxu3 %v2558_v18  ;;  %v348_v42 = vsel %vm3435_vm5, %v343_v32, %v347_v22  ;;  %v2865_v8 = vld [vmem:[#allocation3 + $0x24] sm:$0xf]  ;;  %v2235_v9 = vld [vmem:[#allocation3 + $0x30] sm:$0xf0]  ;;  %v2510_v12 = vor.u32 %v2933_v63, %v2507_v0  ;;  %v2746_v19 = vor.u32 %v2995_v4, %v2745_v2  ;;  %v2729_v21 = vld [vmem:[#allocation3 + $0x400] sm:$0xf] }
  0x54   : > { %350 = vst [vmem:[#allocation2 + $0x4] sm:$0xf] %v348_v42  ;;  %1432 = vmatpush.bf16.msrb.mxu0 %v2794_v24  ;;  %v374_v1 = vsel %vm3448_vm8, %v368_v56, %v373_v57  ;;  %v2897_v13 = vld [vmem:[#allocation3 + $0x124] sm:$0xf]  ;;  %v2363_v14 = vld [vmem:[#allocation3 + $0x130] sm:$0xf0]  ;;  %v2238_v20 = vor.u32 %v2865_v8, %v2235_v9  ;;  %v383_v24 = vsel %vm3457_vm11, %v2214_v5, %v382_v15 }
  0x55   : > { %1445 = vmatpush.bf16.msrb.mxu1 %v2286_v25  ;;  %376 = vst [vmem:[#allocation2 + $0xc] sm:$0xf] %v374_v1  ;;  %v2929_v16 = vld [vmem:[#allocation3 + $0x224] sm:$0xf]  ;;  %v2491_v17 = vld [vmem:[#allocation3 + $0x230] sm:$0xf0]  ;;  %v2366_v26 = vor.u32 %v2897_v13, %v2363_v14 }
  0x56   : > { %1458 = vmatpush.bf16.msrb.mxu2 %v2414_v31  ;;  %v2991_v22 = vld [vmem:[#allocation3 + $0x40c] sm:$0xf0]  ;;  %v2861_v23 = vld [vmem:[#allocation3 + $0x4] sm:$0xf]  ;;  %v2219_v61 = vld [vmem:[#allocation3 + $0x10] sm:$0xf0]  ;;  %v2494_v29 = vor.u32 %v2929_v16, %v2491_v17 }
  0x57   : > { %1471 = vmatpush.bf16.msrb.mxu3 %v2542_v41  ;;  %v2893_v28 = vld [vmem:[#allocation3 + $0x104] sm:$0xf]  ;;  %385 = vst [vmem:[#allocation2 + $0x10] sm:$0xf] %v383_v24  ;;  %v2347_v30 = vld [vmem:[#allocation3 + $0x110] sm:$0xf0]  ;;  %v2730_v41 = vor.u32 %v2991_v22, %v2729_v21  ;;  %v2222_v42 = vor.u32 %v2861_v23, %v2219_v61 }
  0x58   : > { %1433 = vmatpush.bf16.msrb.mxu0 %v2778_v48  ;;  %v2925_v31 = vld [vmem:[#allocation3 + $0x204] sm:$0xf]  ;;  %v2475_v32 = vld [vmem:[#allocation3 + $0x210] sm:$0xf0]  ;;  %v2337_v40 = vld [vmem:[#allocation3 + $0xe8] sm:$0xf]  ;;  %v2350_v48 = vor.u32 %v2893_v28, %v2347_v30 }
  0x59   : > { %1446 = vmatpush.bf16.msrb.mxu1 %v2270_v52  ;;  %v2985_v34 = vld [vmem:[#allocation3 + $0x3e4] sm:$0xf]  ;;  %v2715_v35 = vld [vmem:[#allocation3 + $0x3f0] sm:$0xf0]  ;;  %v2892_v43 = vld [vmem:[#allocation3 + $0xf4] sm:$0xf0]  ;;  %v2478_v49 = vor.u32 %v2925_v31, %v2475_v32 }
  0x5a   : > { %1459 = vmatpush.bf16.msrb.mxu2 %v2398_v53  ;;  %v3017_v38 = vld [vmem:[#allocation3 + $0x4e4] sm:$0xf]  ;;  %v2843_v39 = vld [vmem:[#allocation3 + $0x4f0] sm:$0xf0]  ;;  %v2465_v44 = vld [vmem:[#allocation3 + $0x1e8] sm:$0xf]  ;;  %v2718_v50 = vor.u32 %v2985_v34, %v2715_v35  ;;  %v2338_v55 = vor.u32 %v2892_v43, %v2337_v40 }
  0x5b   : > { %v386_v11 = vld [vmem:[#allocation2] sm:$0xff]  ;;  %1472 = vmatpush.bf16.msrb.mxu3 %v2526_v58  ;;  %v2924_v45 = vld [vmem:[#allocation3 + $0x1f4] sm:$0xf0]  ;;  %v2846_v51 = vor.u32 %v3017_v38, %v2843_v39  ;;  %v2981_v52 = vld [vmem:[#allocation3 + $0x3c4] sm:$0xf]  ;;  %s2109_s5 = sshll.u32 %s2105_s21, 4  ;;  %s2110_s5 = int_to_ptr.hbm [resolvable:$true] %s2109_s5 }
  0x5c   : > { %v562_v60 = vunpack.c.l.b16 %v386_v11  ;;  %v563_v18 = vunpack.c.h.b16 %v386_v11  ;;  %1434 = vmatpush.bf16.msrb.mxu0 %v2762_v3  ;;  %v387_v33 = vld [vmem:[#allocation2 + $0x8] sm:$0xff]  ;;  %v3013_v54 = vld [vmem:[#allocation3 + $0x4c4] sm:$0xf]  ;;  %v2466_v56 = vor.u32 %v2924_v45, %v2465_v44  ;;  %v2321_v59 = vld [vmem:[#allocation3 + $0xc8] sm:$0xf]  ;;  %s2094_s28 = scalar_lea.sflag [#allocation5], %s319_s8 }
  0x5d   : > { %1447 = vmatpush.bf16.msrb.mxu1 %v2254_v6  ;;  %v564_v36 = vunpack.c.l.b16 %v387_v33  ;;  %v565_v37 = vunpack.c.h.b16 %v387_v33  ;;  %v2699_v53 = vld [vmem:[#allocation3 + $0x3d0] sm:$0xf0]  ;;  %v2888_v62 = vld [vmem:[#allocation3 + $0xd4] sm:$0xf0]  ;;  %v2449_v63 = vld [vmem:[#allocation3 + $0x1c8] sm:$0xf] }
  0x5e   : > { %v3464_v25 = vpack.c.b16 %v562_v60, %v562_v60  ;;  %1460 = vmatpush.bf16.msrb.mxu2 %v2382_v7  ;;  %v3466_v27 = vpack.c.b16 %v563_v18, %v563_v18  ;;  %v388_v57 = vld [vmem:[#allocation2 + $0x10] sm:$0xf]  ;;  %v2827_v58 = vld [vmem:[#allocation3 + $0x4d0] sm:$0xf0]  ;;  %v2920_v0 = vld [vmem:[#allocation3 + $0x1d4] sm:$0xf0]  ;;  %v2702_v2 = vor.u32 %v2981_v52, %v2699_v53  ;;  %v2322_v4 = vor.u32 %v2888_v62, %v2321_v59 }
  0x5f   : > { %1473 = vmatpush.bf16.msrb.mxu3 %v2510_v12  ;;  %v3470_v46 = vpack.c.b16 %v564_v36, %v564_v36  ;;  %v3472_v47 = vpack.c.b16 %v565_v37, %v565_v37  ;;  %v566_v1 = vunpack.c.l.b16 %v388_v57  ;;  %v2830_v3 = vor.u32 %v3013_v54, %v2827_v58  ;;  %v2977_v6 = vld [vmem:[#allocation3 + $0x3a4] sm:$0xf]  ;;  %v2811_v8 = vld [vmem:[#allocation3 + $0x4b0] sm:$0xf0]  ;;  %v2305_v10 = vld [vmem:[#allocation3 + $0xa8] sm:$0xf] }
  0x60   : > { %1385 = vmatmul.bf16.vlgmr.msra.gmra.mxu0 %v3464_v25  ;;  %1398 = vmatmul.bf16.vlgmr.msra.gmra.mxu1 %v3466_v27  ;;  %v2450_v5 = vor.u32 %v2920_v0, %v2449_v63  ;;  %v3009_v7 = vld [vmem:[#allocation3 + $0x4a4] sm:$0xf]  ;;  %v2683_v9 = vld [vmem:[#allocation3 + $0x3b0] sm:$0xf0]  ;;  %v2884_v11 = vld [vmem:[#allocation3 + $0xb4] sm:$0xf0] }
  0x61   : > { %1435 = vmatpush.bf16.msrb.mxu0 %v2746_v19  ;;  %1448 = vmatpush.bf16.msrb.mxu1 %v2238_v20  ;;  %v2433_v12 = vld [vmem:[#allocation3 + $0x1a8] sm:$0xf]  ;;  %v2916_v13 = vld [vmem:[#allocation3 + $0x1b4] sm:$0xf0]  ;;  %v3476_v14 = vpack.c.b16 %v566_v1, %v566_v1  ;;  %v2814_v15 = vor.u32 %v3009_v7, %v2811_v8  ;;  %v2686_v60 = vor.u32 %v2977_v6, %v2683_v9  ;;  %v2973_v17 = vld [vmem:[#allocation3 + $0x384] sm:$0xf] }
  0x62   : > { %1461 = vmatpush.bf16.msrb.mxu2 %v2366_v26  ;;  %1424 = vmatmul.bf16.vlgmr.msra.gmra.mxu3 %v3472_v47  ;;  %v2306_v16 = vor.u32 %v2884_v11, %v2305_v10  ;;  %v3005_v18 = vld [vmem:[#allocation3 + $0x484] sm:$0xf]  ;;  %v2795_v19 = vld [vmem:[#allocation3 + $0x490] sm:$0xf0]  ;;  %v2434_v20 = vor.u32 %v2916_v13, %v2433_v12  ;;  %v2289_v22 = vld [vmem:[#allocation3 + $0x88] sm:$0xf] }
  0x63   : > { %1474 = vmatpush.bf16.msrb.mxu3 %v2494_v29  ;;  %1411 = vmatmul.bf16.vlgmr.msra.gmra.mxu2 %v3470_v46  ;;  %v2667_v21 = vld [vmem:[#allocation3 + $0x390] sm:$0xf0]  ;;  %v2880_v23 = vld [vmem:[#allocation3 + $0x94] sm:$0xf0]  ;;  %v2417_v24 = vld [vmem:[#allocation3 + $0x188] sm:$0xf]  ;;  %v2798_v61 = vor.u32 %v3005_v18, %v2795_v19 }
  0x64   : > { %v2912_v26 = vld [vmem:[#allocation3 + $0x194] sm:$0xf0]  ;;  %v2670_v28 = vor.u32 %v2973_v17, %v2667_v21  ;;  %v2290_v29 = vor.u32 %v2880_v23, %v2289_v22  ;;  %v2969_v30 = vld [vmem:[#allocation3 + $0x364] sm:$0xf]  ;;  %v2779_v32 = vld [vmem:[#allocation3 + $0x470] sm:$0xf0] }
  0x65   : > { %1436 = vmatpush.bf16.msrb.mxu0 %v2730_v41  ;;  %1449 = vmatpush.bf16.msrb.mxu1 %v2222_v42  ;;  %v3001_v31 = vld [vmem:[#allocation3 + $0x464] sm:$0xf]  ;;  %v2418_v33 = vor.u32 %v2912_v26, %v2417_v24  ;;  %v2651_v34 = vld [vmem:[#allocation3 + $0x370] sm:$0xf0]  ;;  %v2273_v35 = vld [vmem:[#allocation3 + $0x68] sm:$0xf] }
  0x66   : > { %1462 = vmatpush.bf16.msrb.mxu2 %v2350_v48  ;;  %v2876_v36 = vld [vmem:[#allocation3 + $0x74] sm:$0xf0]  ;;  %v2401_v37 = vld [vmem:[#allocation3 + $0x168] sm:$0xf]  ;;  %v2782_v39 = vor.u32 %v3001_v31, %v2779_v32  ;;  %v2654_v40 = vor.u32 %v2969_v30, %v2651_v34  ;;  %v2965_v42 = vld [vmem:[#allocation3 + $0x344] sm:$0xf] }
  0x67   : > { %1475 = vmatpush.bf16.msrb.mxu3 %v2478_v49  ;;  %v2908_v38 = vld [vmem:[#allocation3 + $0x174] sm:$0xf0]  ;;  %v2274_v41 = vor.u32 %v2876_v36, %v2273_v35  ;;  %v2997_v43 = vld [vmem:[#allocation3 + $0x444] sm:$0xf]  ;;  %v2763_v44 = vld [vmem:[#allocation3 + $0x450] sm:$0xf0] }
  0x68   : > { %v2402_v45 = vor.u32 %v2908_v38, %v2401_v37  ;;  %v2635_v48 = vld [vmem:[#allocation3 + $0x350] sm:$0xf0]  ;;  %v2257_v49 = vld [vmem:[#allocation3 + $0x48] sm:$0xf]  ;;  %v2904_v52 = vld [vmem:[#allocation3 + $0x154] sm:$0xf0]  ;;  %v2766_v53 = vor.u32 %v2997_v43, %v2763_v44 }
  0x69   : > { %1481 = vmatpush.bf16.msra.mxu0 %v2718_v50  ;;  %1494 = vmatpush.bf16.msra.mxu1 %v2846_v51  ;;  %v2872_v50 = vld [vmem:[#allocation3 + $0x54] sm:$0xf0]  ;;  %v2385_v51 = vld [vmem:[#allocation3 + $0x148] sm:$0xf]  ;;  %v2638_v54 = vor.u32 %v2965_v42, %v2635_v48  ;;  %v2993_v57 = vld [vmem:[#allocation3 + $0x424] sm:$0xf] }
  0x6a   : > { %1507 = vmatpush.bf16.msra.mxu2 %v2338_v55  ;;  %v2258_v55 = vor.u32 %v2872_v50, %v2257_v49  ;;  %v2747_v58 = vld [vmem:[#allocation3 + $0x430] sm:$0xf0]  ;;  %v2386_v59 = vor.u32 %v2904_v52, %v2385_v51  ;;  %v2241_v63 = vld [vmem:[#allocation3 + $0x28] sm:$0xf]  ;;  %v2868_v0 = vld [vmem:[#allocation3 + $0x34] sm:$0xf0] }
  0x6b   : > { %1520 = vmatpush.bf16.msra.mxu3 %v2466_v56  ;;  %v2961_v56 = vld [vmem:[#allocation3 + $0x324] sm:$0xf]  ;;  %v2619_v62 = vld [vmem:[#allocation3 + $0x330] sm:$0xf0]  ;;  %v2369_v1 = vld [vmem:[#allocation3 + $0x128] sm:$0xf]  ;;  %v2242_v7 = vor.u32 %v2868_v0, %v2241_v63 }
  0x6c   : > { %v2622_v6 = vor.u32 %v2961_v56, %v2619_v62  ;;  %v2989_v8 = vld [vmem:[#allocation3 + $0x404] sm:$0xf]  ;;  %v2731_v9 = vld [vmem:[#allocation3 + $0x410] sm:$0xf0]  ;;  %v2225_v10 = vld [vmem:[#allocation3 + $0x8] sm:$0xf] }
  0x6d   : > { %1482 = vmatpush.bf16.msra.mxu0 %v2702_v2  ;;  %1495 = vmatpush.bf16.msra.mxu1 %v2830_v3  ;;  %v2900_v2 = vld [vmem:[#allocation3 + $0x134] sm:$0xf0]  ;;  %v2750_v3 = vor.u32 %v2993_v57, %v2747_v58  ;;  %v2353_v13 = vld [vmem:[#allocation3 + $0x108] sm:$0xf]  ;;  %v2734_v18 = vor.u32 %v2989_v8, %v2731_v9  ;;  %v2890_v24 = vld [vmem:[#allocation3 + $0xec] sm:$0xf] }
  0x6e   : > { %1508 = vmatpush.bf16.msra.mxu2 %v2322_v4  ;;  %v2957_v4 = vld [vmem:[#allocation3 + $0x304] sm:$0xf]  ;;  %v2370_v11 = vor.u32 %v2900_v2, %v2369_v1  ;;  %v2864_v12 = vld [vmem:[#allocation3 + $0x14] sm:$0xf0]  ;;  %v2721_v17 = vld [vmem:[#allocation3 + $0x3e8] sm:$0xf] }
  0x6f   : > { %1521 = vmatpush.bf16.msra.mxu3 %v2450_v5  ;;  %v2603_v5 = vld [vmem:[#allocation3 + $0x310] sm:$0xf0]  ;;  %v2988_v19 = vld [vmem:[#allocation3 + $0x3f4] sm:$0xf0]  ;;  %v2226_v23 = vor.u32 %v2864_v12, %v2225_v10  ;;  %v2339_v26 = vld [vmem:[#allocation3 + $0xf8] sm:$0xf0] }
  0x70   : > { %1437 = vmatmul.bf16.vlgmr.msrb.gmra.mxu0 %v3476_v14  ;;  %1450 = vmatmul.bf16.vlgmr.msrb.gmra.mxu1 %v3464_v25  ;;  %v3020_v21 = vld [vmem:[#allocation3 + $0x4f4] sm:$0xf0]  ;;  %v2606_v22 = vor.u32 %v2957_v4, %v2603_v5  ;;  %v2577_v31 = vld [vmem:[#allocation3 + $0x2c8] sm:$0xf]  ;;  %v2342_v34 = vor.u32 %v2890_v24, %v2339_v26  ;;  %v2886_v38 = vld [vmem:[#allocation3 + $0xcc] sm:$0xf] }
  0x71   : > { %1496 = vmatpush.bf16.msra.mxu1 %v2814_v15  ;;  %1483 = vmatpush.bf16.msra.mxu0 %v2686_v60  ;;  %v2896_v15 = vld [vmem:[#allocation3 + $0x114] sm:$0xf0]  ;;  %v2593_v60 = vld [vmem:[#allocation3 + $0x2e8] sm:$0xf]  ;;  %v2882_v52 = vld [vmem:[#allocation3 + $0xac] sm:$0xf] }
  0x72   : > { %1509 = vmatpush.bf16.msra.mxu2 %v2306_v16  ;;  %1476 = vmatmul.bf16.vlgmr.msrb.gmra.mxu3 %v3470_v46  ;;  %v2956_v16 = vld [vmem:[#allocation3 + $0x2f4] sm:$0xf0]  ;;  %v2833_v36 = vld [vmem:[#allocation3 + $0x4c8] sm:$0xf]  ;;  %v2878_v2 = vld [vmem:[#allocation3 + $0x8c] sm:$0xf] }
  0x73   : > { %1522 = vmatpush.bf16.msra.mxu3 %v2434_v20  ;;  %1463 = vmatmul.bf16.vlgmr.msrb.gmra.mxu2 %v3466_v27  ;;  %v2849_v20 = vld [vmem:[#allocation3 + $0x4e8] sm:$0xf]  ;;  %v2952_v32 = vld [vmem:[#allocation3 + $0x2d4] sm:$0xf0]  ;;  %s3213_s26 = sshra.s32 %s2110_s5, 4  ;;  %s3219_s18 = scalar_lea.hbm %s3611_s7, 32  ;;  %s3214_s26 = int_to_ptr.hbm [resolvable:$true] %s3213_s26 }
  0x74   : > { %v2850_v30 = vor.u32 %v3020_v21, %v2849_v20  ;;  %v2984_v35 = vld [vmem:[#allocation3 + $0x3d4] sm:$0xf0]  ;;  %v2561_v43 = vld [vmem:[#allocation3 + $0x2a8] sm:$0xf]  ;;  %s3215_s10 = scalar_lea.hbm %s3214_s26, 16  ;;  %p3220_p3 = scmp.lt.s32.totalorder %s3214_s26, %s3611_s7 }
  0x75   : > { %1497 = vmatpush.bf16.msra.mxu1 %v2798_v61  ;;  %1484 = vmatpush.bf16.msra.mxu0 %v2670_v28  ;;  %v2354_v61 = vor.u32 %v2896_v15, %v2353_v13  ;;  %v2594_v28 = vor.u32 %v2956_v16, %v2593_v60  ;;  %v3016_v37 = vld [vmem:[#allocation3 + $0x4d4] sm:$0xf0]  ;;  %v2817_v50 = vld [vmem:[#allocation3 + $0x4a8] sm:$0xf]  ;;  %v2874_v15 = vld [vmem:[#allocation3 + $0x6c] sm:$0xf]  ;;  %p3216_p0 = scmp.ne.s32.totalorder %s3214_s26, %s3215_s10  ;;  %p3221_p4 = scmp.lt.s32.totalorder %s3219_s18, %s3215_s10 }
  0x76   : > { %1510 = vmatpush.bf16.msra.mxu2 %v2290_v29  ;;  %v2722_v29 = vor.u32 %v2988_v19, %v2721_v17  ;;  %v2834_v42 = vor.u32 %v3016_v37, %v2833_v36  ;;  %v2948_v44 = vld [vmem:[#allocation3 + $0x2b4] sm:$0xf0]  ;;  %v2545_v57 = vld [vmem:[#allocation3 + $0x288] sm:$0xf]  ;;  %v2275_v60 = vld [vmem:[#allocation3 + $0x78] sm:$0xf0] }
  0x77   : > { %1523 = vmatpush.bf16.msra.mxu3 %v2418_v33  ;;  %v2705_v33 = vld [vmem:[#allocation3 + $0x3c8] sm:$0xf]  ;;  %v2980_v49 = vld [vmem:[#allocation3 + $0x3b4] sm:$0xf0]  ;;  %p3217_p1 = pnand %p3216_p0, %p3359_p5  ;;  %p3222_p7 = por %p3221_p4, %p3220_p3 }
  0x78   : > { %v3012_v51 = vld [vmem:[#allocation3 + $0x4b4] sm:$0xf0]  ;;  %v2801_v0 = vld [vmem:[#allocation3 + $0x488] sm:$0xf] }
  0x79   : > { %1498 = vmatpush.bf16.msra.mxu1 %v2782_v39  ;;  %1485 = vmatpush.bf16.msra.mxu0 %v2654_v40  ;;  %v2323_v39 = vld [vmem:[#allocation3 + $0xd8] sm:$0xf0]  ;;  %v2578_v40 = vor.u32 %v2952_v32, %v2577_v31  ;;  %v2818_v56 = vor.u32 %v3012_v51, %v2817_v50  ;;  %v2944_v58 = vld [vmem:[#allocation3 + $0x294] sm:$0xf0]  ;;  %v2657_v9 = vld [vmem:[#allocation3 + $0x368] sm:$0xf]  ;;  %p3218_p2 = pneg %p3217_p1 }
  0x7a   : > { %1511 = vmatpush.bf16.msra.mxu2 %v2274_v41  ;;  %v2706_v41 = vor.u32 %v2984_v35, %v2705_v33  ;;  %v2326_v48 = vor.u32 %v2886_v38, %v2323_v39  ;;  %v2976_v63 = vld [vmem:[#allocation3 + $0x394] sm:$0xf0]  ;;  %v2546_v4 = vor.u32 %v2944_v58, %v2545_v57  ;;  %v2785_v12 = vld [vmem:[#allocation3 + $0x468] sm:$0xf]  ;;  %v2866_v39 = vld [vmem:[#allocation3 + $0x2c] sm:$0xf] }
  0x7b   : > { %1524 = vmatpush.bf16.msra.mxu3 %v2402_v45  ;;  %v2689_v45 = vld [vmem:[#allocation3 + $0x3a8] sm:$0xf]  ;;  %v3008_v1 = vld [vmem:[#allocation3 + $0x494] sm:$0xf0]  ;;  %v2954_v57 = vld [vmem:[#allocation3 + $0x2ec] sm:$0xf]  ;;  %p3223_p8 = pnand %p3222_p7, %p3218_p2 }
  0x7c   : > { %v2940_v8 = vld [vmem:[#allocation3 + $0x274] sm:$0xf0]  ;;  %v2513_v19 = vld [vmem:[#allocation3 + $0x248] sm:$0xf] }
  0x7d   : > { %1499 = vmatpush.bf16.msra.mxu1 %v2766_v53  ;;  %1486 = vmatpush.bf16.msra.mxu0 %v2638_v54  ;;  %v2307_v53 = vld [vmem:[#allocation3 + $0xb8] sm:$0xf0]  ;;  %v2562_v54 = vor.u32 %v2948_v44, %v2561_v43  ;;  %v3004_v13 = vld [vmem:[#allocation3 + $0x474] sm:$0xf0]  ;;  %v2641_v21 = vld [vmem:[#allocation3 + $0x348] sm:$0xf] }
  0x7e   : > { %1512 = vmatpush.bf16.msra.mxu2 %v2258_v55  ;;  %v2690_v55 = vor.u32 %v2980_v49, %v2689_v45  ;;  %v2310_v62 = vor.u32 %v2882_v52, %v2307_v53  ;;  %v2936_v20 = vld [vmem:[#allocation3 + $0x254] sm:$0xf0]  ;;  %v2769_v24 = vld [vmem:[#allocation3 + $0x448] sm:$0xf]  ;;  %v2862_v53 = vld [vmem:[#allocation3 + $0xc] sm:$0xf] }
  0x7f   : > { %1525 = vmatpush.bf16.msra.mxu3 %v2386_v59  ;;  %v2673_v59 = vld [vmem:[#allocation3 + $0x388] sm:$0xf]  ;;  %v3000_v26 = vld [vmem:[#allocation3 + $0x454] sm:$0xf0] }
  0x80   : > { %v2674_v5 = vor.u32 %v2976_v63, %v2673_v59  ;;  %v2770_v31 = vor.u32 %v3000_v26, %v2769_v24  ;;  %v2497_v32 = vld [vmem:[#allocation3 + $0x228] sm:$0xf]  ;;  %v2932_v33 = vld [vmem:[#allocation3 + $0x234] sm:$0xf0]  ;;  %v2595_v59 = vld [vmem:[#allocation3 + $0x2f8] sm:$0xf0] }
  0x81   : > { %1500 = vmatpush.bf16.msra.mxu1 %v2750_v3  ;;  %1487 = vmatpush.bf16.msra.mxu0 %v2622_v6  ;;  %v2291_v3 = vld [vmem:[#allocation3 + $0x98] sm:$0xf0]  ;;  %v2802_v6 = vor.u32 %v3008_v1, %v2801_v0  ;;  %v2964_v36 = vld [vmem:[#allocation3 + $0x334] sm:$0xf0]  ;;  %v2753_v37 = vld [vmem:[#allocation3 + $0x428] sm:$0xf] }
  0x82   : > { %1513 = vmatpush.bf16.msra.mxu2 %v2242_v7  ;;  %v2529_v7 = vld [vmem:[#allocation3 + $0x268] sm:$0xf]  ;;  %v2294_v10 = vor.u32 %v2878_v2, %v2291_v3  ;;  %v2996_v38 = vld [vmem:[#allocation3 + $0x434] sm:$0xf0]  ;;  %v2723_v63 = vld [vmem:[#allocation3 + $0x3f8] sm:$0xf0] }
  0x83   : > { %1526 = vmatpush.bf16.msra.mxu3 %v2370_v11  ;;  %v2972_v11 = vld [vmem:[#allocation3 + $0x374] sm:$0xf0]  ;;  %v2530_v16 = vor.u32 %v2940_v8, %v2529_v7  ;;  %v2754_v45 = vor.u32 %v2996_v38, %v2753_v37  ;;  %v2737_v50 = vld [vmem:[#allocation3 + $0x408] sm:$0xf]  ;;  %v3018_v2 = vld [vmem:[#allocation3 + $0x4ec] sm:$0xf] }
  0x84   : > { %v2658_v17 = vor.u32 %v2972_v11, %v2657_v9  ;;  %v2928_v43 = vld [vmem:[#allocation3 + $0x214] sm:$0xf0]  ;;  %v2851_v3 = vld [vmem:[#allocation3 + $0x4f8] sm:$0xf0]  ;;  %v2918_v8 = vld [vmem:[#allocation3 + $0x1cc] sm:$0xf] }
  0x85   : > { %1501 = vmatpush.bf16.msra.mxu1 %v2734_v18  ;;  %1488 = vmatpush.bf16.msra.mxu0 %v2606_v22  ;;  %v2786_v18 = vor.u32 %v3004_v13, %v2785_v12  ;;  %v2278_v22 = vor.u32 %v2874_v15, %v2275_v60  ;;  %v2960_v49 = vld [vmem:[#allocation3 + $0x314] sm:$0xf0]  ;;  %v2451_v9 = vld [vmem:[#allocation3 + $0x1d8] sm:$0xf0]  ;;  %v2854_v11 = vor.u32 %v3018_v2, %v2851_v3  ;;  %v2982_v13 = vld [vmem:[#allocation3 + $0x3cc] sm:$0xf] }
  0x86   : > { %1514 = vmatpush.bf16.msra.mxu2 %v2226_v23  ;;  %v2968_v23 = vld [vmem:[#allocation3 + $0x354] sm:$0xf0]  ;;  %v2579_v12 = vld [vmem:[#allocation3 + $0x2d8] sm:$0xf0]  ;;  %v3014_v60 = vld [vmem:[#allocation3 + $0x4cc] sm:$0xf] }
  0x87   : > { %1527 = vmatpush.bf16.msra.mxu3 %v2354_v61  ;;  %v2870_v61 = vld [vmem:[#allocation3 + $0x4c] sm:$0xf]  ;;  %v2992_v52 = vld [vmem:[#allocation3 + $0x414] sm:$0xf0]  ;;  %v2707_v15 = vld [vmem:[#allocation3 + $0x3d8] sm:$0xf0] }
  0x88   : > { %1489 = vmatmul.bf16.vlgmr.msra.gmra.mxu0 %v3472_v47  ;;  %1502 = vmatmul.bf16.vlgmr.msra.gmra.mxu1 %v3476_v14  ;;  %v2738_v1 = vor.u32 %v2992_v52, %v2737_v50  ;;  %v2563_v24 = vld [vmem:[#allocation3 + $0x2b8] sm:$0xf0]  ;;  %v2978_v26 = vld [vmem:[#allocation3 + $0x3ac] sm:$0xf] }
  0x89   : > { %1533 = vmatpush.bf16.msrb.mxu0 %v2594_v28  ;;  %1546 = vmatpush.bf16.msrb.mxu1 %v2722_v29  ;;  %v2259_v28 = vld [vmem:[#allocation3 + $0x58] sm:$0xf0]  ;;  %v2514_v29 = vor.u32 %v2936_v20, %v2513_v19  ;;  %v2710_v19 = vor.u32 %v2982_v13, %v2707_v15  ;;  %v2914_v20 = vld [vmem:[#allocation3 + $0x1ac] sm:$0xf] }
  0x8a   : > { %1559 = vmatpush.bf16.msrb.mxu2 %v2850_v30  ;;  %1528 = vmatmul.bf16.vlgmr.msra.gmra.mxu3 %v3466_v27  ;;  %v2642_v30 = vor.u32 %v2968_v23, %v2641_v21  ;;  %v2262_v35 = vor.u32 %v2870_v61, %v2259_v28  ;;  %v2435_v21 = vld [vmem:[#allocation3 + $0x1b8] sm:$0xf0]  ;;  %v3010_v28 = vld [vmem:[#allocation3 + $0x4ac] sm:$0xf] }
  0x8b   : > { %1572 = vmatpush.bf16.msrb.mxu3 %v2342_v34  ;;  %1515 = vmatmul.bf16.vlgmr.msra.gmra.mxu2 %v3464_v25  ;;  %v2625_v34 = vld [vmem:[#allocation3 + $0x328] sm:$0xf]  ;;  %v2691_v61 = vld [vmem:[#allocation3 + $0x3b8] sm:$0xf0]  ;;  %v2974_v38 = vld [vmem:[#allocation3 + $0x38c] sm:$0xf] }
  0x8c   : > { %v2626_v44 = vor.u32 %v2964_v36, %v2625_v34  ;;  %v2419_v34 = vld [vmem:[#allocation3 + $0x198] sm:$0xf0]  ;;  %v2998_v3 = vld [vmem:[#allocation3 + $0x44c] sm:$0xf] }
  0x8d   : > { %1534 = vmatpush.bf16.msrb.mxu0 %v2578_v40  ;;  %1547 = vmatpush.bf16.msrb.mxu1 %v2706_v41  ;;  %v2243_v40 = vld [vmem:[#allocation3 + $0x38] sm:$0xf0]  ;;  %v2498_v41 = vor.u32 %v2932_v33, %v2497_v32  ;;  %v2694_v32 = vor.u32 %v2978_v26, %v2691_v61  ;;  %v2910_v33 = vld [vmem:[#allocation3 + $0x18c] sm:$0xf] }
  0x8e   : > { %1560 = vmatpush.bf16.msrb.mxu2 %v2834_v42  ;;  %v2481_v42 = vld [vmem:[#allocation3 + $0x208] sm:$0xf]  ;;  %v2246_v51 = vor.u32 %v2866_v39, %v2243_v40  ;;  %v2547_v37 = vld [vmem:[#allocation3 + $0x298] sm:$0xf0]  ;;  %v3006_v40 = vld [vmem:[#allocation3 + $0x48c] sm:$0xf] }
  0x8f   : > { %1573 = vmatpush.bf16.msrb.mxu3 %v2326_v48  ;;  %v2609_v48 = vld [vmem:[#allocation3 + $0x308] sm:$0xf]  ;;  %v2482_v58 = vor.u32 %v2928_v43, %v2481_v42  ;;  %v2675_v39 = vld [vmem:[#allocation3 + $0x398] sm:$0xf0]  ;;  %v2422_v42 = vor.u32 %v2910_v33, %v2419_v34  ;;  %v2962_v13 = vld [vmem:[#allocation3 + $0x32c] sm:$0xf] }
  0x90   : > { %v2610_v0 = vor.u32 %v2960_v49, %v2609_v48  ;;  %v2938_v48 = vld [vmem:[#allocation3 + $0x26c] sm:$0xf]  ;;  %v2531_v50 = vld [vmem:[#allocation3 + $0x278] sm:$0xf0] }
  0x91   : > { %1535 = vmatpush.bf16.msrb.mxu0 %v2562_v54  ;;  %1548 = vmatpush.bf16.msrb.mxu1 %v2690_v55  ;;  %v2227_v54 = vld [vmem:[#allocation3 + $0x18] sm:$0xf0]  ;;  %v2922_v55 = vld [vmem:[#allocation3 + $0x1ec] sm:$0xf] }
  0x92   : > { %1561 = vmatpush.bf16.msrb.mxu2 %v2818_v56  ;;  %v2467_v56 = vld [vmem:[#allocation3 + $0x1f8] sm:$0xf0]  ;;  %v2958_v26 = vld [vmem:[#allocation3 + $0x30c] sm:$0xf] }
  0x93   : > { %1574 = vmatpush.bf16.msrb.mxu3 %v2310_v62  ;;  %v2986_v62 = vld [vmem:[#allocation3 + $0x3ec] sm:$0xf]  ;;  %v2659_v52 = vld [vmem:[#allocation3 + $0x378] sm:$0xf0] }
  0x94   : > { %v2726_v7 = vor.u32 %v2986_v62, %v2723_v63  ;;  %v2934_v62 = vld [vmem:[#allocation3 + $0x24c] sm:$0xf]  ;;  %v2643_v2 = vld [vmem:[#allocation3 + $0x358] sm:$0xf0] }
  0x95   : > { %1536 = vmatpush.bf16.msrb.mxu0 %v2546_v4  ;;  %1549 = vmatpush.bf16.msrb.mxu1 %v2674_v5  ;;  %v2230_v4 = vor.u32 %v2862_v53, %v2227_v54  ;;  %v2470_v5 = vor.u32 %v2922_v55, %v2467_v56  ;;  %v3002_v53 = vld [vmem:[#allocation3 + $0x46c] sm:$0xf]  ;;  %v2787_v54 = vld [vmem:[#allocation3 + $0x478] sm:$0xf0]  ;;  %v2534_v56 = vor.u32 %v2938_v48, %v2531_v50  ;;  %v1694_v50 = vld [vmem:[#allocation6] sm:$0xff] }
  0x96   : > { %1562 = vmatpush.bf16.msrb.mxu2 %v2802_v6  ;;  %v2598_v6 = vor.u32 %v2954_v57, %v2595_v59  ;;  %v2387_v59 = vld [vmem:[#allocation3 + $0x158] sm:$0xf0]  ;;  %v2790_v63 = vor.u32 %v3002_v53, %v2787_v54  ;;  %v1723_v53 = vld [vmem:[#allocation6 + $0xe8] sm:$0xff] }
  0x97   : > { %1575 = vmatpush.bf16.msrb.mxu3 %v2294_v10  ;;  %v2950_v10 = vld [vmem:[#allocation3 + $0x2cc] sm:$0xf]  ;;  %v2627_v15 = vld [vmem:[#allocation3 + $0x338] sm:$0xf0] }
  0x98   : > { %v2611_v61 = vld [vmem:[#allocation3 + $0x318] sm:$0xf0] }
  0x99   : > { %1537 = vmatpush.bf16.msrb.mxu0 %v2530_v16  ;;  %1550 = vmatpush.bf16.msrb.mxu1 %v2658_v17  ;;  %v2835_v16 = vld [vmem:[#allocation3 + $0x4d8] sm:$0xf0]  ;;  %v2454_v17 = vor.u32 %v2918_v8, %v2451_v9  ;;  %v2898_v8 = vld [vmem:[#allocation3 + $0x12c] sm:$0xf] }
  0x9a   : > { %1563 = vmatpush.bf16.msrb.mxu2 %v2786_v18  ;;  %v2582_v18 = vor.u32 %v2950_v10, %v2579_v12  ;;  %v2838_v23 = vor.u32 %v3014_v60, %v2835_v16  ;;  %v2371_v9 = vld [vmem:[#allocation3 + $0x138] sm:$0xf0]  ;;  %v2930_v10 = vld [vmem:[#allocation3 + $0x22c] sm:$0xf] }
  0x9b   : > { %1576 = vmatpush.bf16.msrb.mxu3 %v2278_v22  ;;  %v2946_v22 = vld [vmem:[#allocation3 + $0x2ac] sm:$0xf]  ;;  %v2499_v12 = vld [vmem:[#allocation3 + $0x238] sm:$0xf0] }
  0x9c   : > { %v2994_v60 = vld [vmem:[#allocation3 + $0x42c] sm:$0xf]  ;;  %v2755_v16 = vld [vmem:[#allocation3 + $0x438] sm:$0xf0] }
  0x9d   : > { %1538 = vmatpush.bf16.msrb.mxu0 %v2514_v29  ;;  %1551 = vmatpush.bf16.msrb.mxu1 %v2642_v30  ;;  %v2819_v29 = vld [vmem:[#allocation3 + $0x4b8] sm:$0xf0]  ;;  %v2438_v30 = vor.u32 %v2914_v20, %v2435_v21  ;;  %v2894_v20 = vld [vmem:[#allocation3 + $0x10c] sm:$0xf] }
  0x9e   : > { %1564 = vmatpush.bf16.msrb.mxu2 %v2770_v31  ;;  %v2566_v31 = vor.u32 %v2946_v22, %v2563_v24  ;;  %v2822_v36 = vor.u32 %v3010_v28, %v2819_v29  ;;  %v2355_v21 = vld [vmem:[#allocation3 + $0x118] sm:$0xf0]  ;;  %v2926_v22 = vld [vmem:[#allocation3 + $0x20c] sm:$0xf] }
  0x9f   : > { %1577 = vmatpush.bf16.msrb.mxu3 %v2262_v35  ;;  %v2942_v35 = vld [vmem:[#allocation3 + $0x28c] sm:$0xf]  ;;  %v2483_v24 = vld [vmem:[#allocation3 + $0x218] sm:$0xf0] }
  0xa0   : > { %v2550_v43 = vor.u32 %v2942_v35, %v2547_v37  ;;  %v2990_v28 = vld [vmem:[#allocation3 + $0x40c] sm:$0xf]  ;;  %v2739_v29 = vld [vmem:[#allocation3 + $0x418] sm:$0xf0]  ;;  %v1708_v35 = vld [vmem:[#allocation6 + $0x70] sm:$0xff] }
  0xa1   : > { %1539 = vmatpush.bf16.msrb.mxu0 %v2498_v41  ;;  %1552 = vmatpush.bf16.msrb.mxu1 %v2626_v44  ;;  %v2803_v41 = vld [vmem:[#allocation3 + $0x498] sm:$0xf0]  ;;  %v2906_v44 = vld [vmem:[#allocation3 + $0x16c] sm:$0xf]  ;;  %v2742_v33 = vor.u32 %v2990_v28, %v2739_v29  ;;  %v1706_v37 = vld [vmem:[#allocation6 + $0x60] sm:$0xff] }
  0xa2   : > { %1565 = vmatpush.bf16.msrb.mxu2 %v2754_v45  ;;  %v2403_v45 = vld [vmem:[#allocation3 + $0x178] sm:$0xf0]  ;;  %v2806_v49 = vor.u32 %v3006_v40, %v2803_v41  ;;  %v1703_v40 = vld [vmem:[#allocation6 + $0x48] sm:$0xff]  ;;  %v1702_v41 = vld [vmem:[#allocation6 + $0x40] sm:$0xff] }
  0xa3   : > { %1578 = vmatpush.bf16.msrb.mxu3 %v2246_v51  ;;  %v2970_v51 = vld [vmem:[#allocation3 + $0x36c] sm:$0xf]  ;;  %v2406_v55 = vor.u32 %v2906_v44, %v2403_v45  ;;  %v1709_v34 = vld [vmem:[#allocation6 + $0x78] sm:$0xff] }
  0xa4   : > { %v2662_v57 = vor.u32 %v2970_v51, %v2659_v52  ;;  %v1695_v44 = vld [vmem:[#allocation6 + $0x8] sm:$0xff]  ;;  %v1725_v51 = vld [vmem:[#allocation6 + $0xf8] sm:$0xff]  ;;  %v1724_v52 = vld [vmem:[#allocation6 + $0xf0] sm:$0xff] }
  0xa5   : > { %1540 = vmatpush.bf16.msrb.mxu0 %v2482_v58  ;;  %1553 = vmatpush.bf16.msrb.mxu1 %v2610_v0  ;;  %v2902_v58 = vld [vmem:[#allocation3 + $0x14c] sm:$0xf]  ;;  %v2515_v0 = vld [vmem:[#allocation3 + $0x258] sm:$0xf0] }
  0xa6   : > { %1566 = vmatpush.bf16.msrb.mxu2 %v2738_v1  ;;  %v2966_v1 = vld [vmem:[#allocation3 + $0x34c] sm:$0xf] }
  0xa7   : > { %1579 = vmatpush.bf16.msrb.mxu3 %v2230_v4  ;;  %v2771_v4 = vld [vmem:[#allocation3 + $0x458] sm:$0xf0] }
  0xa8   : > { %1541 = vmatmul.bf16.vlgmr.msrb.gmra.mxu0 %v3470_v46  ;;  %1554 = vmatmul.bf16.vlgmr.msrb.gmra.mxu1 %v3472_v47 }
  0xa9   : > { %1585 = vmatpush.bf16.msra.mxu0 %v2470_v5  ;;  %1598 = vmatpush.bf16.msra.mxu1 %v2598_v6  ;;  %v2390_v5 = vor.u32 %v2902_v58, %v2387_v59  ;;  %v2518_v6 = vor.u32 %v2934_v62, %v2515_v0  ;;  %v1720_v62 = vld [vmem:[#allocation6 + $0xd0] sm:$0xff] }
  0xaa   : > { %1611 = vmatpush.bf16.msra.mxu2 %v2726_v7  ;;  %1580 = vmatmul.bf16.vlgmr.msrb.gmra.mxu3 %v3464_v25  ;;  %v2678_v25 = vor.u32 %v2974_v38, %v2675_v39  ;;  %v2646_v7 = vor.u32 %v2966_v1, %v2643_v2  ;;  %v1705_v38 = vld [vmem:[#allocation6 + $0x58] sm:$0xff]  ;;  %v1704_v39 = vld [vmem:[#allocation6 + $0x50] sm:$0xff]  ;;  %v1719_v1 = vld [vmem:[#allocation6 + $0xc8] sm:$0xff] }
  0xab   : > { %1624 = vmatpush.bf16.msra.mxu3 %v2854_v11  ;;  %1567 = vmatmul.bf16.vlgmr.msrb.gmra.mxu2 %v3476_v14  ;;  %v2774_v11 = vor.u32 %v2998_v3, %v2771_v4  ;;  %v1718_v4 = vld [vmem:[#allocation6 + $0xc0] sm:$0xff] }
  0xad   : > { %1586 = vmatpush.bf16.msra.mxu0 %v2454_v17  ;;  %1599 = vmatpush.bf16.msra.mxu1 %v2582_v18  ;;  %v2374_v17 = vor.u32 %v2898_v8, %v2371_v9  ;;  %v2502_v18 = vor.u32 %v2930_v10, %v2499_v12  ;;  %v1716_v8 = vld [vmem:[#allocation6 + $0xb0] sm:$0xff] }
  0xae   : > { %1612 = vmatpush.bf16.msra.mxu2 %v2710_v19  ;;  %v2630_v19 = vor.u32 %v2962_v13, %v2627_v15  ;;  %v1715_v15 = vld [vmem:[#allocation6 + $0xa8] sm:$0xff] }
  0xaf   : > { %1625 = vmatpush.bf16.msra.mxu3 %v2838_v23  ;;  %v2758_v23 = vor.u32 %v2994_v60, %v2755_v16 }
  0xb1   : > { %1587 = vmatpush.bf16.msra.mxu0 %v2438_v30  ;;  %1600 = vmatpush.bf16.msra.mxu1 %v2566_v31  ;;  %v2358_v30 = vor.u32 %v2894_v20, %v2355_v21  ;;  %v2486_v31 = vor.u32 %v2926_v22, %v2483_v24  ;;  %v1713_v20 = vld [vmem:[#allocation6 + $0x98] sm:$0xff] }
  0xb2   : > { %1613 = vmatpush.bf16.msra.mxu2 %v2694_v32  ;;  %v2614_v32 = vor.u32 %v2958_v26, %v2611_v61  ;;  %v1712_v26 = vld [vmem:[#allocation6 + $0x90] sm:$0xff] }
  0xb3   : > { %1626 = vmatpush.bf16.msra.mxu3 %v2822_v36  ;;  %v1707_v36 = vld [vmem:[#allocation6 + $0x68] sm:$0xff] }
  0xb5   : > { %1588 = vmatpush.bf16.msra.mxu0 %v2422_v42  ;;  %1601 = vmatpush.bf16.msra.mxu1 %v2550_v43  ;;  %v1701_v42 = vld [vmem:[#allocation6 + $0x38] sm:$0xff]  ;;  %v3497_v43 = vld [vmem:[%s3606_s2] sm:$0xf] }
  0xb6   : > { %1614 = vmatpush.bf16.msra.mxu2 %v2678_v25  ;;  %v1696_v25 = vld [vmem:[#allocation6 + $0x10] sm:$0xff]  ;;  %v551_v45 = vperm.slane %v3497_v43, 0  ;;  %v552_v22 = vperm.slane %v3497_v43, 1 }
  0xb7   : > { %1627 = vmatpush.bf16.msra.mxu3 %v2806_v49 }
  0xb9   : > { %1589 = vmatpush.bf16.msra.mxu0 %v2406_v55  ;;  %1602 = vmatpush.bf16.msra.mxu1 %v2534_v56  ;;  %v1722_v55 = vld [vmem:[#allocation6 + $0xe0] sm:$0xff]  ;;  %v1721_v56 = vld [vmem:[#allocation6 + $0xd8] sm:$0xff] }
  0xba   : > { %1615 = vmatpush.bf16.msra.mxu2 %v2662_v57 }
  0xbb   : > { %1628 = vmatpush.bf16.msra.mxu3 %v2790_v63 }
  0xbd   : > { %1590 = vmatpush.bf16.msra.mxu0 %v2390_v5  ;;  %1603 = vmatpush.bf16.msra.mxu1 %v2518_v6 }
  0xbe   : > { %1616 = vmatpush.bf16.msra.mxu2 %v2646_v7  ;;  %v1717_v7 = vld [vmem:[#allocation6 + $0xb8] sm:$0xff] }
  0xbf   : > { %1629 = vmatpush.bf16.msra.mxu3 %v2774_v11 }
  0xc1   : > { %1591 = vmatpush.bf16.msra.mxu0 %v2374_v17  ;;  %1604 = vmatpush.bf16.msra.mxu1 %v2502_v18  ;;  %v1714_v17 = vld [vmem:[#allocation6 + $0xa0] sm:$0xff] }
  0xc2   : > { %1617 = vmatpush.bf16.msra.mxu2 %v2630_v19 }
  0xc3   : > { %1630 = vmatpush.bf16.msra.mxu3 %v2758_v23 }
  0xc5   : > { %1592 = vmatpush.bf16.msra.mxu0 %v2358_v30  ;;  %1605 = vmatpush.bf16.msra.mxu1 %v2486_v31  ;;  %v1711_v30 = vld [vmem:[#allocation6 + $0x88] sm:$0xff] }
  0xc6   : > { %1618 = vmatpush.bf16.msra.mxu2 %v2614_v32  ;;  %v1741_v32 = vld [vmem:[#allocation6 + $0x178] sm:$0xff] }
  0xc7   : > { %1631 = vmatpush.bf16.msra.mxu3 %v2742_v33  ;;  %v1740_v33 = vld [vmem:[#allocation6 + $0x170] sm:$0xff] }
  0xc8   : > { %1593 = vmatmul.bf16.vlgmr.msra.gmra.mxu0 %v3466_v27  ;;  %1606 = vmatmul.bf16.vlgmr.msra.gmra.mxu1 %v3470_v46  ;;  %v1700_v27 = vld [vmem:[#allocation6 + $0x30] sm:$0xff]  ;;  %v1699_v46 = vld [vmem:[#allocation6 + $0x28] sm:$0xff] }
  0xc9   : > { %1758 = vmatpush.msrb.mxu0 %v1709_v34  ;;  %1619 = vmatmul.bf16.vlgmr.msra.gmra.mxu2 %v3472_v47  ;;  %v1698_v47 = vld [vmem:[#allocation6 + $0x20] sm:$0xff] }
  0xca   : > { %1632 = vmatmul.bf16.vlgmr.msra.gmra.mxu3 %v3476_v14  ;;  %v1697_v14 = vld [vmem:[#allocation6 + $0x18] sm:$0xff]  ;;  %1778 = vmatpush.msrb.mxu1 %v1725_v51 }
  0xcb   : > { %1759 = vmatpush.msrb.mxu0 %v1708_v35  ;;  %1798 = vmatpush.msrb.mxu2 %v1741_v32  ;;  %v1752_v32 = vld [vmem:[#allocation6 + $0x1d0] sm:$0xff] }
  0xcc   : > { %1779 = vmatpush.msrb.mxu1 %v1724_v52 }
  0xcd   : > { %1760 = vmatpush.msrb.mxu0 %v1707_v36  ;;  %1799 = vmatpush.msrb.mxu2 %v1740_v33 }
  0xce   : > { %1780 = vmatpush.msrb.mxu1 %v1723_v53 }
  0xcf   : > { %1761 = vmatpush.msrb.mxu0 %v1706_v37 }
  0xd0   : > { %1781 = vmatpush.msrb.mxu1 %v1722_v55 }
  0xd1   : > { %1762 = vmatpush.msrb.mxu0 %v1705_v38  ;;  %v1710_v38 = vld [vmem:[#allocation6 + $0x80] sm:$0xff] }
  0xd2   : > { %1782 = vmatpush.msrb.mxu1 %v1721_v56 }
  0xd3   : > { %1763 = vmatpush.msrb.mxu0 %v1704_v39  ;;  %v1739_v39 = vld [vmem:[#allocation6 + $0x168] sm:$0xff] }
  0xd4   : > { %1783 = vmatpush.msrb.mxu1 %v1720_v62  ;;  %1800 = vmatpush.msrb.mxu2 %v1739_v39 }
  0xd5   : > { %1764 = vmatpush.msrb.mxu0 %v1703_v40 }
  0xd6   : > { %1784 = vmatpush.msrb.mxu1 %v1719_v1  ;;  %v1733_v1 = vld [vmem:[#allocation6 + $0x138] sm:$0xff] }
  0xd7   : > { %1765 = vmatpush.msrb.mxu0 %v1702_v41  ;;  %v1738_v41 = vld [vmem:[#allocation6 + $0x160] sm:$0xff] }
  0xd8   : > { %1785 = vmatpush.msrb.mxu1 %v1718_v4  ;;  %1801 = vmatpush.msrb.mxu2 %v1738_v41  ;;  %v1732_v4 = vld [vmem:[#allocation6 + $0x130] sm:$0xff] }
  0xd9   : > { %1766 = vmatpush.msrb.mxu0 %v1701_v42 }
  0xda   : > { %1786 = vmatpush.msrb.mxu1 %v1717_v7 }
  0xdb   : > { %1767 = vmatpush.msrb.mxu0 %v1700_v27 }
  0xdc   : > { %1787 = vmatpush.msrb.mxu1 %v1716_v8 }
  0xdd   : > { %1768 = vmatpush.msrb.mxu0 %v1699_v46  ;;  %v1386_v48 = vpop.f32.mrf.mxu0  ;;  %v1399_v49 = vpop.f32.mrf.mxu1  ;;  %v1737_v46 = vld [vmem:[#allocation6 + $0x158] sm:$0xff] }
  0xde   : > { %v1387_v54 = vadd.f32 %v1386_v48, %v551_v45  ;;  %1788 = vmatpush.msrb.mxu1 %v1715_v15  ;;  %1802 = vmatpush.msrb.mxu2 %v1737_v46  ;;  %v1736_v45 = vld [vmem:[#allocation6 + $0x150] sm:$0xff]  ;;  %v1729_v15 = vld [vmem:[#allocation6 + $0x118] sm:$0xff] }
  0xdf   : > { %1769 = vmatpush.msrb.mxu0 %v1698_v47 }
  0xe0   : > { %v1400_v58 = vadd.f32 %v1399_v49, %v1387_v54  ;;  %1789 = vmatpush.msrb.mxu1 %v1714_v17  ;;  %1803 = vmatpush.msrb.mxu2 %v1736_v45  ;;  %v1747_v45 = vld [vmem:[#allocation6 + $0x1a8] sm:$0xff] }
  0xe1   : > { %1770 = vmatpush.msrb.mxu0 %v1697_v14 }
  0xe2   : > { %1790 = vmatpush.msrb.mxu1 %v1713_v20  ;;  %v1726_v20 = vld [vmem:[#allocation6 + $0x100] sm:$0xff] }
  0xe3   : > { %1771 = vmatpush.msrb.mxu0 %v1696_v25 }
  0xe4   : > { %1791 = vmatpush.msrb.mxu1 %v1712_v26 }
  0xe5   : > { %1772 = vmatpush.msrb.mxu0 %v1695_v44  ;;  %v1388_v57 = vpop.f32.mrf.mxu0  ;;  %v1401_v59 = vpop.f32.mrf.mxu1 }
  0xe6   : > { %v1412_v63 = vpop.f32.mrf.mxu2  ;;  %v1425_v0 = vpop.f32.mrf.mxu3  ;;  %1792 = vmatpush.msrb.mxu1 %v1711_v30  ;;  %v1734_v59 = vld [vmem:[#allocation6 + $0x140] sm:$0xff] }
  0xe7   : > { %1773 = vmatpush.msrb.mxu0 %v1694_v50  ;;  %v1413_v2 = vadd.f32 %v1412_v63, %v1400_v58  ;;  %v1735_v50 = vld [vmem:[#allocation6 + $0x148] sm:$0xff] }
  0xe8   : > { %1793 = vmatpush.msrb.mxu1 %v1710_v38  ;;  %1804 = vmatpush.msrb.mxu2 %v1735_v50 }
  0xe9   : > { %v1426_v3 = vadd.f32 %v1425_v0, %v1413_v2 }
  0xea   : > { %1805 = vmatpush.msrb.mxu2 %v1734_v59 }
  0xec   : > { %1806 = vmatpush.msrb.mxu2 %v1733_v1  ;;  %v1742_v1 = vld [vmem:[#allocation6 + $0x180] sm:$0xff] }
  0xed   : > { %v1438_v5 = vpop.f32.mrf.mxu0  ;;  %v1451_v9 = vpop.f32.mrf.mxu1 }
  0xee   : > { %v3500_v6 = vadd.f32 %v1438_v5, %v1426_v3  ;;  %v1414_v12 = vpop.f32.mrf.mxu2  ;;  %v1427_v13 = vpop.f32.mrf.mxu3  ;;  %v1452_v34 = vadd.f32 %v1451_v9, %v552_v22  ;;  %v1731_v5 = vld [vmem:[#allocation6 + $0x128] sm:$0xff]  ;;  %1807 = vmatpush.msrb.mxu2 %v1732_v4  ;;  %v1730_v9 = vld [vmem:[#allocation6 + $0x120] sm:$0xff]  ;;  %v1756_v22 = vld [vmem:[#allocation6 + $0x1f0] sm:$0xff] }
  0xf0   : > { %v1637_v10 = vrot.slane %v3500_v6, 4  ;;  %v1661_v11 = vmul.f32 %v3500_v6, %v3500_v6  ;;  %1808 = vmatpush.msrb.mxu2 %v1731_v5 }
  0xf2   : > { %v1638_v60 = vadd.f32 %v1637_v10, %v3500_v6  ;;  %v1665_v16 = vrot.slane %v1661_v11, 4  ;;  %1809 = vmatpush.msrb.mxu2 %v1730_v9 }
  0xf4   : > { %v1639_v18 = vrot.slane %v1638_v60, 2  ;;  %v1666_v19 = vadd.f32 %v1665_v16, %v1661_v11  ;;  %v1728_v16 = vld [vmem:[#allocation6 + $0x110] sm:$0xff]  ;;  %1810 = vmatpush.msrb.mxu2 %v1729_v15 }
  0xf5   : > { %v1440_v21 = vpop.f32.mrf.mxu0  ;;  %v1453_v61 = vpop.f32.mrf.mxu1 }
  0xf6   : > { %v1640_v23 = vadd.f32 %v1639_v18, %v1638_v60  ;;  %v1667_v24 = vrot.slane %v1666_v19, 2  ;;  %v1464_v31 = vpop.f32.mrf.mxu2  ;;  %v1477_v37 = vpop.f32.mrf.mxu3  ;;  %v553_v18 = vperm.slane %v3497_v43, 2  ;;  %1811 = vmatpush.msrb.mxu2 %v1728_v16  ;;  %v1757_v21 = vld [vmem:[#allocation6 + $0x1f8] sm:$0xff]  ;;  %v1754_v61 = vld [vmem:[#allocation6 + $0x1e0] sm:$0xff] }
  0xf7   : > { %v1465_v27 = vadd.f32 %v1464_v31, %v1452_v34  ;;  %1818 = vmatpush.msrb.mxu3 %v1757_v21 }
  0xf8   : > { %v1641_v28 = vrot.slane %v1640_v23, 1  ;;  %v1668_v29 = vadd.f32 %v1667_v24, %v1666_v19  ;;  %v1727_v19 = vld [vmem:[#allocation6 + $0x108] sm:$0xff] }
  0xf9   : > { %v1478_v14 = vadd.f32 %v1477_v37, %v1465_v27  ;;  %1812 = vmatpush.msrb.mxu2 %v1727_v19  ;;  %v1755_v24 = vld [vmem:[#allocation6 + $0x1e8] sm:$0xff]  ;;  %1819 = vmatpush.msrb.mxu3 %v1756_v22 }
  0xfa   : > { %v1642_v35 = vadd.f32 %v1641_v28, %v1640_v23  ;;  %v1669_v36 = vrot.slane %v1668_v29, 1  ;;  %v1753_v28 = vld [vmem:[#allocation6 + $0x1d8] sm:$0xff] }
  0xfb   : > { %1813 = vmatpush.msrb.mxu2 %v1726_v20  ;;  %1820 = vmatpush.msrb.mxu3 %v1755_v24 }
  0xfc   : > { %v1670_v40 = vadd.f32 %v1669_v36, %v1668_v29  ;;  %v1751_v36 = vld [vmem:[#allocation6 + $0x1c8] sm:$0xff] }
  0xfd   : > { %1821 = vmatpush.msrb.mxu3 %v1754_v61 }
  0xfe   : > { %v1690_v42 = vsel %vm1689_vm12, %v1642_v35, %v1670_v40  ;;  %v1466_v47 = vpop.f32.mrf.mxu2  ;;  %v1479_v25 = vpop.f32.mrf.mxu3 }
  0xff   : > { %1774 = vmatmul.f32.vlgmr.msrb.gmra.mxu0 %v1690_v42  ;;  %1822 = vmatpush.msrb.mxu3 %v1753_v28  ;;  %v1750_v42 = vld [vmem:[#allocation6 + $0x1c0] sm:$0xff]  ;;  %v1749_v47 = vld [vmem:[#allocation6 + $0x1b8] sm:$0xff] }
 0x101   : > { %1823 = vmatpush.msrb.mxu3 %v1752_v32  ;;  %v1914_v32 = vld [vmem:[#allocation8 + $0x1e8] sm:$0xff] }
 0x102   : > { %1937 = vmatpush.msra.mxu1 %v1914_v32  ;;  %v1860_v32 = vld [vmem:[#allocation8 + $0x38] sm:$0xff] }
 0x103   : > { %1824 = vmatpush.msrb.mxu3 %v1751_v36  ;;  %v1909_v36 = vld [vmem:[#allocation8 + $0x1c0] sm:$0xff] }
 0x105   : > { %v1490_v44 = vpop.f32.mrf.mxu0  ;;  %v1503_v49 = vpop.f32.mrf.mxu1  ;;  %1825 = vmatpush.msrb.mxu3 %v1750_v42  ;;  %v1907_v42 = vld [vmem:[#allocation8 + $0x1b0] sm:$0xff] }
 0x106   : > { %v1491_v48 = vadd.f32 %v1490_v44, %v1478_v14  ;;  %v1748_v44 = vld [vmem:[#allocation6 + $0x1b0] sm:$0xff] }
 0x107   : > { %1826 = vmatpush.msrb.mxu3 %v1749_v47  ;;  %v1902_v47 = vld [vmem:[#allocation8 + $0x188] sm:$0xff] }
 0x108   : > { %v3508_v51 = vadd.f32 %v1503_v49, %v1491_v48 }
 0x109   : > { %1827 = vmatpush.msrb.mxu3 %v1748_v44  ;;  %v1897_v44 = vld [vmem:[#allocation8 + $0x160] sm:$0xff] }
 0x10a   : > { %v1643_v52 = vrot.slane %v3508_v51, 4  ;;  %v1662_v53 = vmul.f32 %v3508_v51, %v3508_v51 }
 0x10b   : > { %1828 = vmatpush.msrb.mxu3 %v1747_v45  ;;  %v1898_v45 = vld [vmem:[#allocation8 + $0x168] sm:$0xff] }
 0x10c   : > { %v1644_v54 = vadd.f32 %v1643_v52, %v3508_v51  ;;  %v1671_v55 = vrot.slane %v1662_v53, 4  ;;  %v1746_v52 = vld [vmem:[#allocation6 + $0x1a0] sm:$0xff] }
 0x10d   : > { %v1492_v57 = vpop.f32.mrf.mxu0  ;;  %v1529_v58 = vpop.f32.mrf.mxu3  ;;  %1829 = vmatpush.msrb.mxu3 %v1746_v52  ;;  %v1894_v52 = vld [vmem:[#allocation8 + $0x148] sm:$0xff] }
 0x10e   : > { %v1516_v56 = vpop.f32.mrf.mxu2  ;;  %v1645_v62 = vrot.slane %v1644_v54, 2  ;;  %v1672_v63 = vadd.f32 %v1671_v55, %v1662_v53  ;;  %v1505_v0 = vpop.f32.mrf.mxu1 }
 0x10f   : > { %v1517_v23 = vadd.f32 %v1516_v56, %v553_v18  ;;  %v1745_v56 = vld [vmem:[#allocation6 + $0x198] sm:$0xff] }
 0x110   : > { %v1646_v2 = vadd.f32 %v1645_v62, %v1644_v54  ;;  %v1673_v3 = vrot.slane %v1672_v63, 2  ;;  %1830 = vmatpush.msrb.mxu3 %v1745_v56  ;;  %v1890_v56 = vld [vmem:[#allocation8 + $0x128] sm:$0xff] }
 0x111   : > { %v1530_v26 = vadd.f32 %v1529_v58, %v1517_v23  ;;  %v1744_v58 = vld [vmem:[#allocation6 + $0x190] sm:$0xff] }
 0x112   : > { %v1647_v7 = vrot.slane %v1646_v2, 1  ;;  %v1674_v8 = vadd.f32 %v1673_v3, %v1672_v63  ;;  %v1743_v63 = vld [vmem:[#allocation6 + $0x188] sm:$0xff]  ;;  %1831 = vmatpush.msrb.mxu3 %v1744_v58  ;;  %v1892_v58 = vld [vmem:[#allocation8 + $0x138] sm:$0xff] }
 0x114   : > { %v1648_v10 = vadd.f32 %v1647_v7, %v1646_v2  ;;  %v1675_v11 = vrot.slane %v1674_v8, 1  ;;  %1832 = vmatpush.msrb.mxu3 %v1743_v63  ;;  %v554_v2 = vperm.slane %v3497_v43, 3  ;;  %v1887_v63 = vld [vmem:[#allocation8 + $0x110] sm:$0xff] }
 0x115   : > { %v1531_v13 = vpop.f32.mrf.mxu3 }
 0x116   : > { %v1518_v12 = vpop.f32.mrf.mxu2  ;;  %v1676_v60 = vadd.f32 %v1675_v11, %v1674_v8  ;;  %1833 = vmatpush.msrb.mxu3 %v1742_v1  ;;  %v1881_v1 = vld [vmem:[#allocation8 + $0xe0] sm:$0xff] }
 0x118   : > { %v1691_v17 = vsel %vm1689_vm12, %v1648_v10, %v1676_v60 }
 0x119   : > { %1794 = vmatmul.f32.vlgmr.msrb.gmra.mxu1 %v1691_v17 }
 0x125   : > { %v1542_v29 = vpop.f32.mrf.mxu0  ;;  %v1555_v30 = vpop.f32.mrf.mxu1 }
 0x126   : > { %v1543_v31 = vadd.f32 %v1542_v29, %v1530_v26 }
 0x128   : > { %v1556_v33 = vadd.f32 %v1555_v30, %v1543_v31  ;;  %v1913_v31 = vld [vmem:[#allocation8 + $0x1e0] sm:$0xff] }
 0x129   : > { %1917 = vmatpush.msra.mxu0 %v1913_v31  ;;  %v1859_v31 = vld [vmem:[#allocation8 + $0x30] sm:$0xff] }
 0x12b   : > { %1918 = vmatpush.msra.mxu0 %v1909_v36  ;;  %v1855_v36 = vld [vmem:[#allocation8 + $0x10] sm:$0xff] }
 0x12d   : > { %v1581_v37 = vpop.f32.mrf.mxu3  ;;  %v1544_v40 = vpop.f32.mrf.mxu0 }
 0x12e   : > { %v1568_v34 = vpop.f32.mrf.mxu2  ;;  %v1557_v41 = vpop.f32.mrf.mxu1  ;;  %v1582_v3 = vadd.f32 %v1581_v37, %v554_v2  ;;  %v1910_v37 = vld [vmem:[#allocation8 + $0x1c8] sm:$0xff]  ;;  %v1905_v40 = vld [vmem:[#allocation8 + $0x1a0] sm:$0xff] }
 0x12f   : > { %v3516_v35 = vadd.f32 %v1568_v34, %v1556_v33  ;;  %v1915_v33 = vld [vmem:[#allocation8 + $0x1f0] sm:$0xff]  ;;  %v1916_v34 = vld [vmem:[#allocation8 + $0x1f8] sm:$0xff]  ;;  %1938 = vmatpush.msra.mxu1 %v1910_v37  ;;  %v1906_v41 = vld [vmem:[#allocation8 + $0x1a8] sm:$0xff]  ;;  %1919 = vmatpush.msra.mxu0 %v1905_v40 }
 0x130   : > { %1957 = vmatpush.msra.mxu2 %v1915_v33  ;;  %1977 = vmatpush.msra.mxu3 %v1916_v34  ;;  %v1882_v2 = vld [vmem:[#allocation8 + $0xe8] sm:$0xff]  ;;  %v1853_v33 = vld [vmem:[#allocation8] sm:$0xff]  ;;  %v1856_v37 = vld [vmem:[#allocation8 + $0x18] sm:$0xff] }
 0x131   : > { %v1649_v38 = vrot.slane %v3516_v35, 4  ;;  %v1663_v39 = vmul.f32 %v3516_v35, %v3516_v35  ;;  %1939 = vmatpush.msra.mxu1 %v1906_v41  ;;  %v1854_v34 = vld [vmem:[#allocation8 + $0x8] sm:$0xff] }
 0x133   : > { %v1650_v27 = vadd.f32 %v1649_v38, %v3516_v35  ;;  %v1677_v46 = vrot.slane %v1663_v39, 4  ;;  %v1911_v38 = vld [vmem:[#allocation8 + $0x1d0] sm:$0xff]  ;;  %1940 = vmatpush.msra.mxu1 %v1902_v47 }
 0x134   : > { %1958 = vmatpush.msra.mxu2 %v1911_v38 }
 0x135   : > { %v1651_v14 = vrot.slane %v1650_v27, 2  ;;  %v1678_v25 = vadd.f32 %v1677_v46, %v1663_v39  ;;  %v1583_v53 = vpop.f32.mrf.mxu3  ;;  %v1912_v39 = vld [vmem:[#allocation8 + $0x1d8] sm:$0xff]  ;;  %v1901_v46 = vld [vmem:[#allocation8 + $0x180] sm:$0xff]  ;;  %1941 = vmatpush.msra.mxu1 %v1898_v45 }
 0x136   : > { %v1570_v48 = vpop.f32.mrf.mxu2  ;;  %1978 = vmatpush.msra.mxu3 %v1912_v39  ;;  %1959 = vmatpush.msra.mxu2 %v1907_v42  ;;  %v1895_v53 = vld [vmem:[#allocation8 + $0x150] sm:$0xff] }
 0x137   : > { %v1652_v49 = vadd.f32 %v1651_v14, %v1650_v27  ;;  %v1679_v50 = vrot.slane %v1678_v25, 2  ;;  %v1908_v27 = vld [vmem:[#allocation8 + $0x1b8] sm:$0xff]  ;;  %v1903_v14 = vld [vmem:[#allocation8 + $0x190] sm:$0xff]  ;;  %1920 = vmatpush.msra.mxu0 %v1901_v46  ;;  %1942 = vmatpush.msra.mxu1 %v1894_v52 }
 0x138   : > { %1979 = vmatpush.msra.mxu3 %v1908_v27  ;;  %v1899_v48 = vld [vmem:[#allocation8 + $0x170] sm:$0xff]  ;;  %1960 = vmatpush.msra.mxu2 %v1903_v14 }
 0x139   : > { %v1653_v54 = vrot.slane %v1652_v49, 1  ;;  %v1680_v55 = vadd.f32 %v1679_v50, %v1678_v25  ;;  %v1904_v25 = vld [vmem:[#allocation8 + $0x198] sm:$0xff]  ;;  %v1893_v50 = vld [vmem:[#allocation8 + $0x140] sm:$0xff]  ;;  %1921 = vmatpush.msra.mxu0 %v1897_v44  ;;  %1943 = vmatpush.msra.mxu1 %v1890_v56 }
 0x13a   : > { %1980 = vmatpush.msra.mxu3 %v1904_v25  ;;  %1961 = vmatpush.msra.mxu2 %v1899_v48 }
 0x13b   : > { %v1681_v57 = vrot.slane %v1680_v55, 1  ;;  %v1654_v59 = vadd.f32 %v1653_v54, %v1652_v49  ;;  %v1900_v49 = vld [vmem:[#allocation8 + $0x178] sm:$0xff]  ;;  %1922 = vmatpush.msra.mxu0 %v1893_v50 }
 0x13c   : > { %v1896_v54 = vld [vmem:[#allocation8 + $0x158] sm:$0xff]  ;;  %1981 = vmatpush.msra.mxu3 %v1900_v49  ;;  %1962 = vmatpush.msra.mxu2 %v1895_v53 }
 0x13d   : > { %v1682_v62 = vadd.f32 %v1681_v57, %v1680_v55  ;;  %v1889_v55 = vld [vmem:[#allocation8 + $0x120] sm:$0xff]  ;;  %v1891_v57 = vld [vmem:[#allocation8 + $0x130] sm:$0xff] }
 0x13e   : > { %1982 = vmatpush.msra.mxu3 %v1896_v54  ;;  %1923 = vmatpush.msra.mxu0 %v1889_v55 }
 0x13f   : > { %v1692_v0 = vsel %vm1689_vm12, %v1654_v59, %v1682_v62  ;;  %v1885_v59 = vld [vmem:[#allocation8 + $0x100] sm:$0xff]  ;;  %v1886_v62 = vld [vmem:[#allocation8 + $0x108] sm:$0xff]  ;;  %1963 = vmatpush.msra.mxu2 %v1891_v57 }
 0x140   : > { %1814 = vmatmul.f32.vlgmr.msrb.gmra.mxu2 %v1692_v0  ;;  %v1888_v0 = vld [vmem:[#allocation8 + $0x118] sm:$0xff]  ;;  %1983 = vmatpush.msra.mxu3 %v1892_v58 }
 0x141   : > { %1924 = vmatpush.msra.mxu0 %v1885_v59  ;;  %1944 = vmatpush.msra.mxu1 %v1886_v62 }
 0x142   : > { %1964 = vmatpush.msra.mxu2 %v1887_v63  ;;  %1984 = vmatpush.msra.mxu3 %v1888_v0 }
 0x143   : > { %1925 = vmatpush.msra.mxu0 %v1881_v1  ;;  %1945 = vmatpush.msra.mxu1 %v1882_v2 }
 0x145   : > { %v1594_v4 = vpop.f32.mrf.mxu0  ;;  %v1607_v5 = vpop.f32.mrf.mxu1 }
 0x146   : > { %v1595_v7 = vadd.f32 %v1594_v4, %v1582_v3  ;;  %v1883_v3 = vld [vmem:[#allocation8 + $0xf0] sm:$0xff]  ;;  %v1884_v4 = vld [vmem:[#allocation8 + $0xf8] sm:$0xff] }
 0x147   : > { %1965 = vmatpush.msra.mxu2 %v1883_v3  ;;  %1985 = vmatpush.msra.mxu3 %v1884_v4 }
 0x148   : > { %v1608_v8 = vadd.f32 %v1607_v5, %v1595_v7  ;;  %v1877_v5 = vld [vmem:[#allocation8 + $0xc0] sm:$0xff]  ;;  %v1878_v7 = vld [vmem:[#allocation8 + $0xc8] sm:$0xff] }
 0x149   : > { %1926 = vmatpush.msra.mxu0 %v1877_v5  ;;  %1946 = vmatpush.msra.mxu1 %v1878_v7 }
 0x14c   : > { %v1620_v9 = vpop.f32.mrf.mxu2 }
 0x14d   : > { %v1621_v10 = vadd.f32 %v1620_v9, %v1608_v8  ;;  %v1633_v11 = vpop.f32.mrf.mxu3  ;;  %v1596_v12 = vpop.f32.mrf.mxu0  ;;  %v1879_v8 = vld [vmem:[#allocation8 + $0xd0] sm:$0xff]  ;;  %v1880_v9 = vld [vmem:[#allocation8 + $0xd8] sm:$0xff] }
 0x14e   : > { %v1609_v13 = vpop.f32.mrf.mxu1  ;;  %1966 = vmatpush.msra.mxu2 %v1879_v8  ;;  %1986 = vmatpush.msra.mxu3 %v1880_v9  ;;  %v1875_v12 = vld [vmem:[#allocation8 + $0xb0] sm:$0xff] }
 0x14f   : > { %v3524_v15 = vadd.f32 %v1633_v11, %v1621_v10  ;;  %v1873_v10 = vld [vmem:[#allocation8 + $0xa0] sm:$0xff]  ;;  %v1874_v11 = vld [vmem:[#allocation8 + $0xa8] sm:$0xff]  ;;  %v1876_v13 = vld [vmem:[#allocation8 + $0xb8] sm:$0xff] }
 0x150   : > { %1927 = vmatpush.msra.mxu0 %v1873_v10  ;;  %1947 = vmatpush.msra.mxu1 %v1874_v11 }
 0x151   : > { %v1655_v60 = vrot.slane %v3524_v15, 4  ;;  %v1664_v16 = vmul.f32 %v3524_v15, %v3524_v15  ;;  %1967 = vmatpush.msra.mxu2 %v1875_v12  ;;  %1987 = vmatpush.msra.mxu3 %v1876_v13  ;;  %v3544_v13 = vld [vmem:[%s3607_s3] sm:$0xf] }
 0x153   : > { %v1656_v43 = vadd.f32 %v1655_v60, %v3524_v15  ;;  %v1683_v17 = vrot.slane %v1664_v16, 4  ;;  %v3280_v60 = vmov 128.0  }
 0x154   : > { %v1622_v18 = vpop.f32.mrf.mxu2  ;;  %3099 = vrcp.f32 %v3280_v60 }
 0x155   : > { %v1657_v19 = vrot.slane %v1656_v43, 2  ;;  %v1684_v20 = vadd.f32 %v1683_v17, %v1664_v16  ;;  %v1635_v21 = vpop.f32.mrf.mxu3  ;;  %v1869_v16 = vld [vmem:[#allocation8 + $0x80] sm:$0xff]  ;;  %v1871_v17 = vld [vmem:[#allocation8 + $0x90] sm:$0xff]  ;;  %v1872_v18 = vld [vmem:[#allocation8 + $0x98] sm:$0xff] }
 0x156   : > { %1928 = vmatpush.msra.mxu0 %v1869_v16  ;;  %1968 = vmatpush.msra.mxu2 %v1871_v17  ;;  %v1867_v21 = vld [vmem:[#allocation8 + $0x70] sm:$0xff] }
 0x157   : > { %v1658_v22 = vadd.f32 %v1657_v19, %v1656_v43  ;;  %v1685_v23 = vrot.slane %v1684_v20, 2  ;;  %v1870_v43 = vld [vmem:[#allocation8 + $0x88] sm:$0xff]  ;;  %1988 = vmatpush.msra.mxu3 %v1872_v18  ;;  %v1865_v19 = vld [vmem:[#allocation8 + $0x60] sm:$0xff] }
 0x158   : > { %1948 = vmatpush.msra.mxu1 %v1870_v43  ;;  %1929 = vmatpush.msra.mxu0 %v1865_v19  ;;  %v3549_v19 = vld [vmem:[%s3608_s4] sm:$0xf] }
 0x159   : > { %v1659_v24 = vrot.slane %v1658_v22, 1  ;;  %v1686_v26 = vadd.f32 %v1685_v23, %v1684_v20  ;;  %v1866_v20 = vld [vmem:[#allocation8 + $0x68] sm:$0xff]  ;;  %1969 = vmatpush.msra.mxu2 %v1867_v21  ;;  %v1861_v23 = vld [vmem:[#allocation8 + $0x40] sm:$0xff] }
 0x15a   : > { %1949 = vmatpush.msra.mxu1 %v1866_v20  ;;  %1930 = vmatpush.msra.mxu0 %v1861_v23 }
 0x15b   : > { %v1687_v61 = vrot.slane %v1686_v26, 1  ;;  %v1660_v28 = vadd.f32 %v1659_v24, %v1658_v22  ;;  %v1868_v22 = vld [vmem:[#allocation8 + $0x78] sm:$0xff]  ;;  %v1862_v24 = vld [vmem:[#allocation8 + $0x48] sm:$0xff] }
 0x15c   : > { %1989 = vmatpush.msra.mxu3 %v1868_v22  ;;  %1950 = vmatpush.msra.mxu1 %v1862_v24 }
 0x15d   : > { %v1688_v29 = vadd.f32 %v1687_v61, %v1686_v26  ;;  %v1863_v26 = vld [vmem:[#allocation8 + $0x50] sm:$0xff]  ;;  %v1864_v61 = vld [vmem:[#allocation8 + $0x58] sm:$0xff] }
 0x15e   : > { %1970 = vmatpush.msra.mxu2 %v1863_v26  ;;  %1990 = vmatpush.msra.mxu3 %v1864_v61  ;;  %v2059_v26 = vperm.slane %v3544_v13, 0 }
 0x15f   : > { %v1693_v30 = vsel %vm1689_vm12, %v1660_v28, %v1688_v29  ;;  %v1857_v28 = vld [vmem:[#allocation8 + $0x20] sm:$0xff]  ;;  %v1858_v29 = vld [vmem:[#allocation8 + $0x28] sm:$0xff] }
 0x160   : > { %1834 = vmatmul.f32.vlgmr.msrb.gmra.mxu3 %v1693_v30  ;;  %v3100_v30 = vpop.eup %3099  ;;  %1931 = vmatpush.msra.mxu0 %v1857_v28 }
 0x161   : > { %1951 = vmatpush.msra.mxu1 %v1858_v29  ;;  %1971 = vmatpush.msra.mxu2 %v1859_v31  ;;  %v1839_v38 = vmul.f32 128.0, %v3100_v30  ;;  %vm1843_vm13 = vweird.f32 %v3100_v30  ;;  %v2073_v31 = vperm.slane %v3549_v19, 0 }
 0x162   : > { %1991 = vmatpush.msra.mxu3 %v1860_v32  ;;  %1932 = vmatpush.msra.mxu0 %v1853_v33 }
 0x163   : > { %1952 = vmatpush.msra.mxu1 %v1854_v34  ;;  %1972 = vmatpush.msra.mxu2 %v1855_v36  ;;  %v1840_v39 = vsub.f32 1.0, %v1839_v38  ;;  %v2060_v34 = vperm.slane %v3544_v13, 1 }
 0x164   : > { %1992 = vmatpush.msra.mxu3 %v1856_v37 }
 0x165   : > { %v1841_v40 = vmul.f32 %v3100_v30, %v1840_v39  ;;  %v2074_v39 = vperm.slane %v3549_v19, 1 }
 0x167   : > { %v1842_v46 = vadd.f32 %v3100_v30, %v1841_v40 }
 0x169   : > { %v1844_v44 = vsel %vm1843_vm13, %v3100_v30, %v1842_v46 }
 0x17c   : > { %v1775_v42 = vpop.f32.mrf.mxu0 }
 0x196   : > { %v1795_v41 = vpop.f32.mrf.mxu1 }
 0x197   : > { %v1796_v47 = vadd.f32 %v1795_v41, %v1775_v42 }
 0x1c3   : > { %v1815_v27 = vpop.f32.mrf.mxu2 }
 0x1c4   : > { %v1816_v14 = vadd.f32 %v1815_v27, %v1796_v47 }
 0x1e3   : > { %v1835_v25 = vpop.f32.mrf.mxu3 }
 0x1e4   : > { %v1836_v45 = vadd.f32 %v1835_v25, %v1816_v14 }
 0x1e6   : > { %v1845_v48 = vmul.f32 %v1844_v44, %v1836_v45 }
 0x1e8   : > { %v1846_v49 = vmul.f32 %v1845_v48, %v1845_v48 }
 0x1ea   : > { %v1848_v50 = vrot.slane %v1846_v49, 7  ;;  %v2061_v49 = vperm.slane %v3544_v13, 2 }
 0x1ec   : > { %v1850_v52 = vsub.f32 %v1845_v48, %v1848_v50 }
 0x1ee   : > { %v1851_v53 = vmax.f32 %v1850_v52, 0.0  ;;  %v2075_v52 = vperm.slane %v3549_v19, 2 }
 0x1f0   : > { %v1852_v54 = vsel %vm1689_vm12, %v1845_v48, %v1851_v53 }
 0x1f1   : > { %1933 = vmatmul.f32.vlgmr.msra.gmra.mxu0 %v1852_v54  ;;  %1953 = vmatmul.f32.vlgmr.msra.gmra.mxu1 %v1852_v54 }
 0x1f2   : > { %1973 = vmatmul.f32.vlgmr.msra.gmra.mxu2 %v1852_v54  ;;  %1993 = vmatmul.f32.vlgmr.msra.gmra.mxu3 %v1852_v54  ;;  %v2062_v54 = vperm.slane %v3544_v13, 3 }
 0x26e   : > { %v1934_v55 = vpop.f32.mrf.mxu0  ;;  %v1954_v56 = vpop.f32.mrf.mxu1 }
 0x26f   : > { %v2005_v57 = vadd.f32 1e-05, %v1934_v55  ;;  %v2006_v58 = vadd.f32 1e-05, %v1954_v56  ;;  %v1997_v11 = vperm.slane %v1934_v55, 0  ;;  %v1998_v18 = vperm.slane %v1954_v56, 0 }
 0x271   : > { %3101 = vrsqrt.f32 %v2005_v57  ;;  %vm2015_vm0 = vweird.f32 %v2005_v57  ;;  %vm2025_vm2 = vweird.f32 %v2006_v58  ;;  %v2001_v23 = vsub.f32 %v3500_v6, %v1997_v11 }
 0x272   : > { %3103 = vrsqrt.f32 %v2006_v58  ;;  %v2002_v32 = vsub.f32 %v3508_v51, %v1998_v18 }
 0x275   : > { %v3532_v59 = vpop.f32.mrf.mxu2  ;;  %v3534_v62 = vpop.f32.mrf.mxu3 }
 0x276   : > { %v2007_v63 = vadd.f32 1e-05, %v3532_v59  ;;  %v3538_v0 = vadd.f32 1e-05, %v3534_v62  ;;  %v1999_v40 = vperm.slane %v3532_v59, 0  ;;  %v2000_v46 = vperm.slane %v3534_v62, 0 }
 0x277   : > { %v3102_v1 = vpop.eup %3101 }
 0x278   : > { %v3104_v2 = vpop.eup %3103  ;;  %v2010_v3 = vmul.f32 %v3102_v1, %v2005_v57  ;;  %3105 = vrsqrt.f32 %v2007_v63  ;;  %vm2016_vm14 = vweird.f32 %v3102_v1  ;;  %vm2035_vm5 = vweird.f32 %v2007_v63 }
 0x279   : > { %v2020_v4 = vmul.f32 %v3104_v2, %v2006_v58  ;;  %3107 = vrsqrt.f32 %v3538_v0  ;;  %vm2026_vm15 = vweird.f32 %v3104_v2  ;;  %vm2017_vm1 = vmor %vm2015_vm0, %vm2016_vm14  ;;  %vm2045_vm8 = vweird.f32 %v3538_v0 }
 0x27a   : > { %v2011_v5 = vmul.f32 %v3102_v1, %v2010_v3  ;;  %vm2027_vm3 = vmor %vm2025_vm2, %vm2026_vm15  ;;  %v2003_v45 = vsub.f32 %v3516_v35, %v1999_v40  ;;  %v2004_v57 = vsub.f32 %v3524_v15, %v2000_v46 }
 0x27b   : > { %v2021_v7 = vmul.f32 %v3104_v2, %v2020_v4 }
 0x27c   : > { %v2012_v8 = vmul.f32 0.5, %v2011_v5 }
 0x27d   : > { %v2022_v9 = vmul.f32 0.5, %v2021_v7 }
 0x27e   : > { %v3106_v10 = vpop.eup %3105  ;;  %v2013_v12 = vsub.f32 1.5, %v2012_v8 }
 0x27f   : > { %v2023_v60 = vsub.f32 1.5, %v2022_v9  ;;  %v2030_v16 = vmul.f32 %v3106_v10, %v2007_v63  ;;  %v3108_v43 = vpop.eup %3107  ;;  %vm2036_vm4 = vweird.f32 %v3106_v10  ;;  %v2076_v63 = vperm.slane %v3549_v19, 3 }
 0x280   : > { %v2014_v17 = vmul.f32 %v3102_v1, %v2013_v12  ;;  %v2040_v22 = vmul.f32 %v3108_v43, %v3538_v0  ;;  %vm2046_vm6 = vweird.f32 %v3108_v43  ;;  %vm2037_vm7 = vmor %vm2035_vm5, %vm2036_vm4 }
 0x281   : > { %v2024_v20 = vmul.f32 %v3104_v2, %v2023_v60  ;;  %v2031_v21 = vmul.f32 %v3106_v10, %v2030_v16  ;;  %vm2047_vm9 = vmor %vm2045_vm8, %vm2046_vm6 }
 0x282   : > { %v2018_v24 = vsel %vm2017_vm1, %v3102_v1, %v2014_v17  ;;  %v2041_v30 = vmul.f32 %v3108_v43, %v2040_v22 }
 0x283   : > { %v2049_v61 = vperm.slane %v2018_v24, 1  ;;  %v2028_v28 = vsel %vm2027_vm3, %v3104_v2, %v2024_v20  ;;  %v2032_v29 = vmul.f32 0.5, %v2031_v21 }
 0x284   : > { %v2050_v33 = vperm.slane %v2028_v28, 1  ;;  %v2042_v6 = vmul.f32 0.5, %v2041_v30 }
 0x285   : > { %v2053_v36 = vmul.f32 %v2049_v61, %v2001_v23  ;;  %v2033_v37 = vsub.f32 1.5, %v2032_v29 }
 0x286   : > { %v2054_v38 = vmul.f32 %v2050_v33, %v2002_v32  ;;  %v2043_v27 = vsub.f32 1.5, %v2042_v6 }
 0x287   : > { %v2067_v41 = vmul.f32 %v2059_v26, %v2053_v36  ;;  %v2034_v42 = vmul.f32 %v3106_v10, %v2033_v37 }
 0x288   : > { %v2068_v51 = vmul.f32 %v2060_v34, %v2054_v38  ;;  %v2044_v25 = vmul.f32 %v3108_v43, %v2043_v27 }
 0x289   : > { %v2081_v47 = vadd.f32 %v2073_v31, %v2067_v41  ;;  %v2038_v14 = vsel %vm2037_vm7, %v3106_v10, %v2034_v42 }
 0x28a   : > { %v2082_v44 = vadd.f32 %v2074_v39, %v2068_v51  ;;  %v2051_v48 = vperm.slane %v2038_v14, 1  ;;  %v2048_v53 = vsel %vm2047_vm9, %v3108_v43, %v2044_v25 }
 0x28b   : > { %v2085_v50 = vmax.f32 %v2081_v47, 0.0  ;;  %v2052_v58 = vperm.slane %v2048_v53, 1 }
 0x28c   : > { %v2086_v55 = vmax.f32 %v2082_v44, 0.0  ;;  %v2055_v56 = vmul.f32 %v2051_v48, %v2003_v45 }
 0x28d   : > { %v2056_v62 = vmul.f32 %v2052_v58, %v2004_v57 }
 0x28e   : > { %v2089_v59 = vpack.c.bf16 %v2086_v55, %v2085_v50  ;;  %v2069_v35 = vmul.f32 %v2061_v49, %v2055_v56 }
 0x28f   : > { %v2070_v1 = vmul.f32 %v2062_v54, %v2056_v62 }
 0x290   : > { %v2083_v0 = vadd.f32 %v2075_v52, %v2069_v35  ;;  %2091 = vst [vmem:[%s321_s15] sm:$0xff] %v2089_v59 }
 0x291   : > { %v2084_v3 = vadd.f32 %v2076_v63, %v2070_v1 }
 0x292   : > { %v2087_v2 = vmax.f32 %v2083_v0, 0.0 }
 0x293   : > { %v2088_v15 = vmax.f32 %v2084_v3, 0.0 }
 0x295   : > { %v2090_v4 = vpack.c.bf16 %v2088_v15, %v2087_v2 }
 0x297   : > { %2092 = vst [vmem:[%s321_s15 + $0x8] sm:$0xff] %v2090_v4 }
 0x298   : > { %3226 = shalt.err (!%p3223_p8)
}
 0x299   : > { %3034 = dma.vmem_to_hbm [thread:$0]  (%p3359_p5), %s2108_s1, 256, %s2110_s5, %s2094_s28  }
 0x29a PF: > { %p3056_p9 = scmp.ge.s32.totalorder %s3269_s27, 2  ;;  %s2121_s23 = sand.u32 1, %s3257_s24  }
 0x29b   : > { %s2122_s29 = scalar_lea.sflag [#allocation5], %s2121_s23 }
 0x29c   : > { %p3047_p10 = pnand %p3056_p9, %p3363_p6 }
 0x29e   : > { %p3048_p11 = pneg %p3047_p10 }
 0x2a0   : > { %3252 = dma.done.wait (%p3048_p11), %s2122_s29, 256  }
 0x2a1   : > { %3254 = vsyncadd (%p3048_p11), %s2122_s29, 4294967040  ;;  %s3631_s8 = sld [smem:[#allocation13_spill]]  ;;  %p19_p12 = scmp.ge.s32.totalorder %s3346_s30, 4  }
 0x2a2   : > { %s3632_s26 = sld [smem:[#allocation14_spill]]  ;;  %s3633_s24 = smov %s3261_s25 }
 0x2a3   : > { %s3635_s27 = smov %s3346_s30  ;;  %21 = sbr.rel (!%p19_p12) target bundleno = 8 (0x8), region = 96 }
 0x2a7   : > { %s3634_s25 = smov %s3631_s8 }
 0x2a8   :  { %2128 = vsyncpa [#allocation4], 1 }
 0x2a9   :  { %2130 = vsyncpa [#allocation4 + $0x1], 1 }
 0x2aa   :  { %2131 = vsyncpa [#allocation7], 1 }
 0x2ab   :  { %2132 = vsyncpa [#allocation5], 1 }
 0x2ac   :  { %2134 = vsyncpa [#allocation5 + $0x1], 1 }

</bundles_post_ra>
